<compile_context>
chip_gen: v5e
topology: v5e:2x2
jax: 0.10.0
libtpu: 0.0.40
codegen_flags: <defaults>
</compile_context>

<pallas_src>
import jax
import jax.numpy as jnp
from jax.experimental import pallas as pl
from jax.experimental.pallas import tpu as pltpu


_VMEM = pl.BlockSpec(memory_space=pltpu.MemorySpace.VMEM)


# ------------------------------ Fused kernel -------------------------------- #

def _make_fused_lstm_net_kernel(n_layers, T, B, D, H, O):
    """Fused LSTM(n_layers) + ReLU + FC kernel (single pallas_call).

    Kernel ref order:
      x2d          (T*B, D)        time-major rows (row = t*B + b)
      w0           (H+D, 4H)       [whh0_t ; wih0_t]   (recurrent part first,
                                    so its slice starts at sublane 0)
      w_up         (L-1, 2H, 4H)   per upper layer [wih_t ; whh_t]   (only L>1)
      b_all        (L, 4H)         combined b_ih + b_hh per layer
      fc           (1, H+1) if O==1 else (H+1, O)      weight + bias packed
      h0, c0       (L, B, H) each
      out, h_n, c_n                (B, O), (L, B, H), (L, B, H)
    """

    def kernel(*refs):
        idx = 0
        x_ref = refs[idx]; idx += 1
        w0_ref = refs[idx]; idx += 1
        wup_ref = None
        if n_layers > 1:
            wup_ref = refs[idx]; idx += 1
        b_ref = refs[idx]; idx += 1
        fc_ref = refs[idx]; idx += 1
        h0_ref = refs[idx]; idx += 1
        c0_ref = refs[idx]; idx += 1
        out_ref, hn_ref, cn_ref = refs[idx], refs[idx + 1], refs[idx + 2]

        f32 = jnp.float32
        G = 4 * H

        # ---- layer-0 input projection hoisted out of the recurrence --------
        # Time-major (T*B, 4H): step t is the contiguous row slab [t*B, (t+1)*B).
        x2d = x_ref[...]                                    # (T*B, D)
        b0 = b_ref[0:1, :]                                  # (1, 4H)
        if D <= 4:
            # K=D is tiny: D rank-1 broadcast-FMAs on the VPU, no MXU fill/drain.
            zx = jnp.broadcast_to(b0, (T * B, G))
            for d in range(D):
                zx = zx + x2d[:, d:d + 1] * w0_ref[H + d:H + d + 1, :]
        else:
            wih0_t = w0_ref[H:H + D, :]
            zx = jnp.dot(x2d, wih0_t, preferred_element_type=f32) + b0

        # ---- resident weights loaded once; bias broadcasts hoisted ---------
        whh0_t = w0_ref[0:H, :]                                        # (H, 4H)
        w_up = [wup_ref[l] for l in range(n_layers - 1)]               # (2H, 4H)
        bias = [jnp.broadcast_to(b_ref[l:l + 1, :], (B, G))
                for l in range(1, n_layers)]

        hs = [h0_ref[l] for l in range(n_layers)]                      # (B, H)
        cs = [c0_ref[l] for l in range(n_layers)]

        def cell(z, c):
            # One full-width sigmoid + one full-width tanh EUP pass; gates are
            # static lane slices (PyTorch gate order i, f, g, o).
            s = jax.nn.sigmoid(z)
            tz = jnp.tanh(z)
            i = s[:, 0:H]
            f = s[:, H:2 * H]
            g = tz[:, 2 * H:3 * H]
            o = s[:, 3 * H:4 * H]
            c_new = f * c + i * g
            h_new = o * jnp.tanh(c_new)
            return h_new, c_new

        # ---- fully unrolled wavefront over time (T static & tiny) ----------
        for t in range(T):
            z0 = zx[t * B:(t + 1) * B, :] + jnp.dot(
                hs[0], whh0_t, preferred_element_type=f32)
            hs[0], cs[0] = cell(z0, cs[0])
            for l in range(1, n_layers):
                # Fused K=2H dot: [h_{l-1} | h_l] @ [wih_t ; whh_t]
                hcat = jnp.concatenate([hs[l - 1], hs[l]], axis=-1)    # (B, 2H)
                z = jnp.dot(hcat, w_up[l - 1],
                            preferred_element_type=f32) + bias[l - 1]
                hs[l], cs[l] = cell(z, cs[l])
            # TODO(synk): inter-layer dropout (p=0.2) is training-only in
            # nn.LSTM; the inference forward pass skips it, so it is omitted.

        for l in range(n_layers):
            hn_ref[l] = hs[l]
            cn_ref[l] = cs[l]

        # ---- fused FC(ReLU(out[:, -1])) epilogue ----------------------------
        r = jnp.maximum(hs[-1], 0.0)                                   # (B, H)
        if O == 1:
            # Tiny output: VPU multiply + lane reduce; fc stored as (1, H+1).
            w = fc_ref[:, 0:H]                                         # (1, H)
            fb = fc_ref[:, H:H + 1]                                    # (1, 1)
            out_ref[...] = jnp.sum(r * w, axis=-1, keepdims=True) + fb
        else:
            # fc stored pre-transposed as (H+1, O): no in-kernel transpose.
            wt = fc_ref[0:H, :]                                        # (H, O)
            fb = fc_ref[H:H + 1, :]                                    # (1, O)
            out_ref[...] = jnp.dot(r, wt, preferred_element_type=f32) + fb

    return kernel


# -------------------------------- Wrapper ----------------------------------- #

def _output_dim_from_params(params, hidden_dim):
    fc = params["fc"]
    if fc.shape[0] == 1 and fc.shape[1] == hidden_dim + 1:
        return 1
    return fc.shape[1]


def lstm_net_forward(params, x, h):
    """Forward pass of LSTMNet.

    x: (B, T, input_dim)   batch_first, like PyTorch
    h: (h0, c0), each (n_layers, B, H)
    returns (out, (h_n, c_n)) with out: (B, output_dim)
    """
    h0, c0 = h
    B, T, D = x.shape
    n_layers, _, H = h0.shape
    O = _output_dim_from_params(params, H)

    kernel = _make_fused_lstm_net_kernel(n_layers, T, B, D, H, O)

    # Time-major flatten (row = t*B + b) so each timestep's gate-input slab is
    # a contiguous static sublane slice inside the kernel.
    x_tm = jnp.transpose(x, (1, 0, 2)).reshape(T * B, D)

    inputs = [x_tm, params["w0"]]
    if n_layers > 1:
        inputs.append(params["w_up"])
    inputs += [params["b"], params["fc"], h0, c0]

    out, h_n, c_n = pl.pallas_call(
        kernel,
        out_shape=(jax.ShapeDtypeStruct((B, O), jnp.float32),
                   jax.ShapeDtypeStruct((n_layers, B, H), jnp.float32),
                   jax.ShapeDtypeStruct((n_layers, B, H), jnp.float32)),
        in_specs=[_VMEM] * len(inputs),
        out_specs=(_VMEM, _VMEM, _VMEM),
    )(*inputs)
    return out, (h_n, c_n)


# --------------------------- Parameter creation ------------------------------ #

def init_params(key, input_dim, hidden_dim, output_dim, n_layers):
    """PyTorch-default-style U(-1/sqrt(H), 1/sqrt(H)) init, pre-packed for the
    kernel:
      w0   = [w_hh0.T ; w_ih0.T]                      (H+D, 4H)
      w_up = stack_l>=1 [w_ih_l.T ; w_hh_l.T]         (L-1, 2H, 4H)
      b    = stack_l (b_ih_l + b_hh_l)                (L, 4H)
      fc   = [fc_w | fc_b] as (1, H+1)  if O==1
             [fc_w.T ; fc_b] as (H+1, O) otherwise
    so the forward pass does no per-call transpose/stack/add ops.
    """
    H = hidden_dim
    k = 1.0 / jnp.sqrt(jnp.float32(H))

    # layer 0
    key, k1, k2, k3, k4 = jax.random.split(key, 5)
    w_ih0 = jax.random.uniform(k1, (4 * H, input_dim), jnp.float32, -k, k)
    w_hh0 = jax.random.uniform(k2, (4 * H, H), jnp.float32, -k, k)
    b_ih0 = jax.random.uniform(k3, (4 * H,), jnp.float32, -k, k)
    b_hh0 = jax.random.uniform(k4, (4 * H,), jnp.float32, -k, k)
    w0 = jnp.concatenate([w_hh0.T, w_ih0.T], axis=0)          # (H+D, 4H)
    biases = [b_ih0 + b_hh0]

    # upper layers: fused [wih_t ; whh_t]
    w_up_list = []
    for _ in range(1, n_layers):
        key, k1, k2, k3, k4 = jax.random.split(key, 5)
        w_ih = jax.random.uniform(k1, (4 * H, H), jnp.float32, -k, k)
        w_hh = jax.random.uniform(k2, (4 * H, H), jnp.float32, -k, k)
        b_ih = jax.random.uniform(k3, (4 * H,), jnp.float32, -k, k)
        b_hh = jax.random.uniform(k4, (4 * H,), jnp.float32, -k, k)
        w_up_list.append(jnp.concatenate([w_ih.T, w_hh.T], axis=0))  # (2H, 4H)
        biases.append(b_ih + b_hh)
    w_up = jnp.stack(w_up_list, axis=0) if n_layers > 1 else None
    b_all = jnp.stack(biases, axis=0)                          # (L, 4H)

    # FC head, packed in the orientation the kernel consumes directly.
    # TODO(synk): nn.Linear actually uses kaiming_uniform for fc_w; kept simple
    # uniform init here (inference semantics are unaffected).
    key, k1, k2 = jax.random.split(key, 3)
    fc_w = jax.random.uniform(k1, (output_dim, H), jnp.float32, -k, k)
    fc_b = jax.random.uniform(k2, (output_dim,), jnp.float32, -k, k)
    if output_dim == 1:
        fc = jnp.concatenate([fc_w.reshape(1, H), fc_b.reshape(1, 1)], axis=1)
    else:
        fc = jnp.concatenate([fc_w.T, fc_b.reshape(1, output_dim)], axis=0)

    return {"w0": w0, "w_up": w_up, "b": b_all, "fc": fc}


# --------------------------- Pure-JAX reference ------------------------------ #

def lstm_net_reference(params, x, h):
    h0, c0 = h
    B, T, D = x.shape
    n_layers, _, H = h0.shape

    w0 = params["w0"]
    whh0_t, wih0_t = w0[0:H], w0[H:H + D]
    b_all = params["b"]

    hs = [h0[l] for l in range(n_layers)]
    cs = [c0[l] for l in range(n_layers)]
    layer_in = x
    for l in range(n_layers):
        if l == 0:
            wih_t, whh_t = wih0_t, whh0_t
        else:
            w_cat = params["w_up"][l - 1]
            wih_t, whh_t = w_cat[0:H], w_cat[H:2 * H]
        bl = b_all[l]
        outs = []
        hl, cl = hs[l], cs[l]
        for t in range(T):
            z = layer_in[:, t, :] @ wih_t + hl @ whh_t + bl
            i = jax.nn.sigmoid(z[:, 0:H])
            f = jax.nn.sigmoid(z[:, H:2 * H])
            g = jnp.tanh(z[:, 2 * H:3 * H])
            o = jax.nn.sigmoid(z[:, 3 * H:4 * H])
            cl = f * cl + i * g
            hl = o * jnp.tanh(cl)
            outs.append(hl)
        hs[l], cs[l] = hl, cl
        layer_in = jnp.stack(outs, axis=1)

    last = layer_in[:, -1, :]
    r = jnp.maximum(last, 0.0)
    fc = params["fc"]
    if fc.shape[0] == 1 and fc.shape[1] == H + 1:        # O == 1 packing
        out = r @ fc[:, 0:H].T + fc[:, H:H + 1]
    else:                                                # (H+1, O) packing
        out = r @ fc[0:H, :] + fc[H:H + 1, :]
    return out, (jnp.stack(hs), jnp.stack(cs))


# ----------------------------------- Main ------------------------------------ #

if __name__ == "__main__":
    batch = 2
    seq = 8
    input_dim = 2          # file is "input_dim_2_LSTM_GRU_RNN.py"
    hidden_dim = 32
    output_dim = 1
    n_layers = 2

    key = jax.random.PRNGKey(0)
    key, pkey, xkey = jax.random.split(key, 3)

    params = init_params(pkey, input_dim, hidden_dim, output_dim, n_layers)
    x = jax.random.normal(xkey, (batch, seq, input_dim), jnp.float32)

    # init_hidden equivalent: zero hidden/cell state per layer
    h0 = jnp.zeros((n_layers, batch, hidden_dim), jnp.float32)
    c0 = jnp.zeros((n_layers, batch, hidden_dim), jnp.float32)

    fwd = jax.jit(lstm_net_forward)
    out, (h_n, c_n) = fwd(params, x, (h0, c0))
    jax.block_until_ready((out, h_n, c_n))

    assert out.shape == (batch, output_dim)
    assert h_n.shape == (n_layers, batch, hidden_dim)
    assert c_n.shape == (n_layers, batch, hidden_dim)

    # Correctness check against a pure-JAX reference of the same math.
    ref_out, (ref_h, ref_c) = jax.jit(lstm_net_reference)(params, x, (h0, c0))
    assert bool(jnp.allclose(out, ref_out, atol=1e-3, rtol=1e-3))
    assert bool(jnp.allclose(h_n, ref_h, atol=1e-3, rtol=1e-3))
    assert bool(jnp.allclose(c_n, ref_c, atol=1e-3, rtol=1e-3))

    print("KERNEL_OK")
</pallas_src>

<mosaic_0001>
module attributes {stable_mosaic.version = 11 : i64} {
  func.func @kernel(%arg0: memref<16x2xf32, #tpu.memory_space<vmem>>, %arg1: memref<34x128xf32, #tpu.memory_space<vmem>>, %arg2: memref<1x64x128xf32, #tpu.memory_space<vmem>>, %arg3: memref<2x128xf32, #tpu.memory_space<vmem>>, %arg4: memref<1x33xf32, #tpu.memory_space<vmem>>, %arg5: memref<2x2x32xf32, #tpu.memory_space<vmem>>, %arg6: memref<2x2x32xf32, #tpu.memory_space<vmem>>, %arg7: memref<2x1xf32, #tpu.memory_space<vmem>>, %arg8: memref<2x2x32xf32, #tpu.memory_space<vmem>>, %arg9: memref<2x2x32xf32, #tpu.memory_space<vmem>>) attributes {dimension_semantics = [], scalar_prefetch = 0 : i64, scratch_operands = 0 : i64, tpu.core_type = #tpu.core_type<tc>} {
    %c0 = arith.constant 0 : index
    %c0_0 = arith.constant 0 : index
    %0 = vector.load %arg0[%c0, %c0_0] : memref<16x2xf32, #tpu.memory_space<vmem>>, vector<16x2xf32>
    %c0_1 = arith.constant 0 : index
    %c0_2 = arith.constant 0 : index
    %1 = vector.load %arg3[%c0_1, %c0_2] : memref<2x128xf32, #tpu.memory_space<vmem>>, vector<1x128xf32>
    %2 = vector.shape_cast %1 : vector<1x128xf32> to vector<1x128xf32>
    %3 = vector.broadcast %2 : vector<1x128xf32> to vector<16x128xf32>
    %4 = vector.extract_strided_slice %0 {offsets = [0, 0], sizes = [16, 1], strides = [1, 1]} : vector<16x2xf32> to vector<16x1xf32>
    %c32 = arith.constant 32 : index
    %c0_3 = arith.constant 0 : index
    %5 = vector.load %arg1[%c32, %c0_3] : memref<34x128xf32, #tpu.memory_space<vmem>>, vector<1x128xf32>
    %6 = vector.broadcast %4 : vector<16x1xf32> to vector<16x128xf32>
    %7 = vector.broadcast %5 : vector<1x128xf32> to vector<16x128xf32>
    %8 = arith.mulf %6, %7 : vector<16x128xf32>
    %9 = arith.addf %3, %8 : vector<16x128xf32>
    %10 = vector.extract_strided_slice %0 {offsets = [0, 1], sizes = [16, 1], strides = [1, 1]} : vector<16x2xf32> to vector<16x1xf32>
    %c33 = arith.constant 33 : index
    %c0_4 = arith.constant 0 : index
    %11 = vector.load %arg1[%c33, %c0_4] : memref<34x128xf32, #tpu.memory_space<vmem>>, vector<1x128xf32>
    %12 = vector.broadcast %10 : vector<16x1xf32> to vector<16x128xf32>
    %13 = vector.broadcast %11 : vector<1x128xf32> to vector<16x128xf32>
    %14 = arith.mulf %12, %13 : vector<16x128xf32>
    %15 = arith.addf %9, %14 : vector<16x128xf32>
    %c0_5 = arith.constant 0 : index
    %c0_6 = arith.constant 0 : index
    %16 = vector.load %arg1[%c0_5, %c0_6] : memref<34x128xf32, #tpu.memory_space<vmem>>, vector<32x128xf32>
    %c0_7 = arith.constant 0 : index
    %c0_8 = arith.constant 0 : index
    %c0_9 = arith.constant 0 : index
    %17 = vector.load %arg2[%c0_7, %c0_8, %c0_9] : memref<1x64x128xf32, #tpu.memory_space<vmem>>, vector<1x64x128xf32>
    %18 = vector.shape_cast %17 : vector<1x64x128xf32> to vector<64x128xf32>
    %c1 = arith.constant 1 : index
    %c0_10 = arith.constant 0 : index
    %19 = vector.load %arg3[%c1, %c0_10] : memref<2x128xf32, #tpu.memory_space<vmem>>, vector<1x128xf32>
    %20 = vector.shape_cast %19 : vector<1x128xf32> to vector<1x128xf32>
    %21 = vector.broadcast %20 : vector<1x128xf32> to vector<2x128xf32>
    %c0_11 = arith.constant 0 : index
    %c0_12 = arith.constant 0 : index
    %c0_13 = arith.constant 0 : index
    %22 = vector.load %arg5[%c0_11, %c0_12, %c0_13] : memref<2x2x32xf32, #tpu.memory_space<vmem>>, vector<1x2x32xf32>
    %23 = vector.shape_cast %22 : vector<1x2x32xf32> to vector<2x32xf32>
    %c1_14 = arith.constant 1 : index
    %c0_15 = arith.constant 0 : index
    %c0_16 = arith.constant 0 : index
    %24 = vector.load %arg5[%c1_14, %c0_15, %c0_16] : memref<2x2x32xf32, #tpu.memory_space<vmem>>, vector<1x2x32xf32>
    %25 = vector.shape_cast %24 : vector<1x2x32xf32> to vector<2x32xf32>
    %c0_17 = arith.constant 0 : index
    %c0_18 = arith.constant 0 : index
    %c0_19 = arith.constant 0 : index
    %26 = vector.load %arg6[%c0_17, %c0_18, %c0_19] : memref<2x2x32xf32, #tpu.memory_space<vmem>>, vector<1x2x32xf32>
    %27 = vector.shape_cast %26 : vector<1x2x32xf32> to vector<2x32xf32>
    %c1_20 = arith.constant 1 : index
    %c0_21 = arith.constant 0 : index
    %c0_22 = arith.constant 0 : index
    %28 = vector.load %arg6[%c1_20, %c0_21, %c0_22] : memref<2x2x32xf32, #tpu.memory_space<vmem>>, vector<1x2x32xf32>
    %29 = vector.shape_cast %28 : vector<1x2x32xf32> to vector<2x32xf32>
    %30 = vector.extract_strided_slice %15 {offsets = [0, 0], sizes = [2, 128], strides = [1, 1]} : vector<16x128xf32> to vector<2x128xf32>
    %cst = arith.constant dense<0.000000e+00> : vector<2x128xf32>
    %31 = tpu.matmul %23, %16, %cst {dimension_numbers = #tpu.dot_dimension_numbers<[1], [0], [0], [1], [0, 0, 1, 1], [], []>} : vector<2x32xf32>, vector<32x128xf32>, vector<2x128xf32> -> vector<2x128xf32>
    %32 = arith.addf %30, %31 : vector<2x128xf32>
    %33 = arith.negf %32 : vector<2x128xf32>
    %34 = math.exp %33 : vector<2x128xf32>
    %cst_23 = arith.constant 1.000000e+00 : f32
    %35 = vector.broadcast %cst_23 : f32 to vector<2x128xf32>
    %36 = arith.addf %35, %34 : vector<2x128xf32>
    %37 = arith.divf %35, %36 : vector<2x128xf32>
    %38 = math.tanh %32 : vector<2x128xf32>
    %39 = vector.extract_strided_slice %37 {offsets = [0, 0], sizes = [2, 32], strides = [1, 1]} : vector<2x128xf32> to vector<2x32xf32>
    %40 = vector.extract_strided_slice %37 {offsets = [0, 32], sizes = [2, 32], strides = [1, 1]} : vector<2x128xf32> to vector<2x32xf32>
    %41 = vector.extract_strided_slice %38 {offsets = [0, 64], sizes = [2, 32], strides = [1, 1]} : vector<2x128xf32> to vector<2x32xf32>
    %42 = vector.extract_strided_slice %37 {offsets = [0, 96], sizes = [2, 32], strides = [1, 1]} : vector<2x128xf32> to vector<2x32xf32>
    %43 = arith.mulf %40, %27 : vector<2x32xf32>
    %44 = arith.mulf %39, %41 : vector<2x32xf32>
    %45 = arith.addf %43, %44 : vector<2x32xf32>
    %46 = math.tanh %45 : vector<2x32xf32>
    %47 = arith.mulf %42, %46 : vector<2x32xf32>
    %48 = tpu.concatenate %47, %25 in 1 : vector<2x32xf32>, vector<2x32xf32> -> vector<2x64xf32>
    %cst_24 = arith.constant dense<0.000000e+00> : vector<2x128xf32>
    %49 = tpu.matmul %48, %18, %cst_24 {dimension_numbers = #tpu.dot_dimension_numbers<[1], [0], [0], [1], [0, 0, 1, 1], [], []>} : vector<2x64xf32>, vector<64x128xf32>, vector<2x128xf32> -> vector<2x128xf32>
    %50 = arith.addf %49, %21 : vector<2x128xf32>
    %51 = arith.negf %50 : vector<2x128xf32>
    %52 = math.exp %51 : vector<2x128xf32>
    %cst_25 = arith.constant 1.000000e+00 : f32
    %53 = vector.broadcast %cst_25 : f32 to vector<2x128xf32>
    %54 = arith.addf %53, %52 : vector<2x128xf32>
    %55 = arith.divf %53, %54 : vector<2x128xf32>
    %56 = math.tanh %50 : vector<2x128xf32>
    %57 = vector.extract_strided_slice %55 {offsets = [0, 0], sizes = [2, 32], strides = [1, 1]} : vector<2x128xf32> to vector<2x32xf32>
    %58 = vector.extract_strided_slice %55 {offsets = [0, 32], sizes = [2, 32], strides = [1, 1]} : vector<2x128xf32> to vector<2x32xf32>
    %59 = vector.extract_strided_slice %56 {offsets = [0, 64], sizes = [2, 32], strides = [1, 1]} : vector<2x128xf32> to vector<2x32xf32>
    %60 = vector.extract_strided_slice %55 {offsets = [0, 96], sizes = [2, 32], strides = [1, 1]} : vector<2x128xf32> to vector<2x32xf32>
    %61 = arith.mulf %58, %29 : vector<2x32xf32>
    %62 = arith.mulf %57, %59 : vector<2x32xf32>
    %63 = arith.addf %61, %62 : vector<2x32xf32>
    %64 = math.tanh %63 : vector<2x32xf32>
    %65 = arith.mulf %60, %64 : vector<2x32xf32>
    %66 = vector.extract_strided_slice %15 {offsets = [2, 0], sizes = [2, 128], strides = [1, 1]} : vector<16x128xf32> to vector<2x128xf32>
    %cst_26 = arith.constant dense<0.000000e+00> : vector<2x128xf32>
    %67 = tpu.matmul %47, %16, %cst_26 {dimension_numbers = #tpu.dot_dimension_numbers<[1], [0], [0], [1], [0, 0, 1, 1], [], []>} : vector<2x32xf32>, vector<32x128xf32>, vector<2x128xf32> -> vector<2x128xf32>
    %68 = arith.addf %66, %67 : vector<2x128xf32>
    %69 = arith.negf %68 : vector<2x128xf32>
    %70 = math.exp %69 : vector<2x128xf32>
    %cst_27 = arith.constant 1.000000e+00 : f32
    %71 = vector.broadcast %cst_27 : f32 to vector<2x128xf32>
    %72 = arith.addf %71, %70 : vector<2x128xf32>
    %73 = arith.divf %71, %72 : vector<2x128xf32>
    %74 = math.tanh %68 : vector<2x128xf32>
    %75 = vector.extract_strided_slice %73 {offsets = [0, 0], sizes = [2, 32], strides = [1, 1]} : vector<2x128xf32> to vector<2x32xf32>
    %76 = vector.extract_strided_slice %73 {offsets = [0, 32], sizes = [2, 32], strides = [1, 1]} : vector<2x128xf32> to vector<2x32xf32>
    %77 = vector.extract_strided_slice %74 {offsets = [0, 64], sizes = [2, 32], strides = [1, 1]} : vector<2x128xf32> to vector<2x32xf32>
    %78 = vector.extract_strided_slice %73 {offsets = [0, 96], sizes = [2, 32], strides = [1, 1]} : vector<2x128xf32> to vector<2x32xf32>
    %79 = arith.mulf %76, %45 : vector<2x32xf32>
    %80 = arith.mulf %75, %77 : vector<2x32xf32>
    %81 = arith.addf %79, %80 : vector<2x32xf32>
    %82 = math.tanh %81 : vector<2x32xf32>
    %83 = arith.mulf %78, %82 : vector<2x32xf32>
    %84 = tpu.concatenate %83, %65 in 1 : vector<2x32xf32>, vector<2x32xf32> -> vector<2x64xf32>
    %cst_28 = arith.constant dense<0.000000e+00> : vector<2x128xf32>
    %85 = tpu.matmul %84, %18, %cst_28 {dimension_numbers = #tpu.dot_dimension_numbers<[1], [0], [0], [1], [0, 0, 1, 1], [], []>} : vector<2x64xf32>, vector<64x128xf32>, vector<2x128xf32> -> vector<2x128xf32>
    %86 = arith.addf %85, %21 : vector<2x128xf32>
    %87 = arith.negf %86 : vector<2x128xf32>
    %88 = math.exp %87 : vector<2x128xf32>
    %cst_29 = arith.constant 1.000000e+00 : f32
    %89 = vector.broadcast %cst_29 : f32 to vector<2x128xf32>
    %90 = arith.addf %89, %88 : vector<2x128xf32>
    %91 = arith.divf %89, %90 : vector<2x128xf32>
    %92 = math.tanh %86 : vector<2x128xf32>
    %93 = vector.extract_strided_slice %91 {offsets = [0, 0], sizes = [2, 32], strides = [1, 1]} : vector<2x128xf32> to vector<2x32xf32>
    %94 = vector.extract_strided_slice %91 {offsets = [0, 32], sizes = [2, 32], strides = [1, 1]} : vector<2x128xf32> to vector<2x32xf32>
    %95 = vector.extract_strided_slice %92 {offsets = [0, 64], sizes = [2, 32], strides = [1, 1]} : vector<2x128xf32> to vector<2x32xf32>
    %96 = vector.extract_strided_slice %91 {offsets = [0, 96], sizes = [2, 32], strides = [1, 1]} : vector<2x128xf32> to vector<2x32xf32>
    %97 = arith.mulf %94, %63 : vector<2x32xf32>
    %98 = arith.mulf %93, %95 : vector<2x32xf32>
    %99 = arith.addf %97, %98 : vector<2x32xf32>
    %100 = math.tanh %99 : vector<2x32xf32>
    %101 = arith.mulf %96, %100 : vector<2x32xf32>
    %102 = vector.extract_strided_slice %15 {offsets = [4, 0], sizes = [2, 128], strides = [1, 1]} : vector<16x128xf32> to vector<2x128xf32>
    %cst_30 = arith.constant dense<0.000000e+00> : vector<2x128xf32>
    %103 = tpu.matmul %83, %16, %cst_30 {dimension_numbers = #tpu.dot_dimension_numbers<[1], [0], [0], [1], [0, 0, 1, 1], [], []>} : vector<2x32xf32>, vector<32x128xf32>, vector<2x128xf32> -> vector<2x128xf32>
    %104 = arith.addf %102, %103 : vector<2x128xf32>
    %105 = arith.negf %104 : vector<2x128xf32>
    %106 = math.exp %105 : vector<2x128xf32>
    %cst_31 = arith.constant 1.000000e+00 : f32
    %107 = vector.broadcast %cst_31 : f32 to vector<2x128xf32>
    %108 = arith.addf %107, %106 : vector<2x128xf32>
    %109 = arith.divf %107, %108 : vector<2x128xf32>
    %110 = math.tanh %104 : vector<2x128xf32>
    %111 = vector.extract_strided_slice %109 {offsets = [0, 0], sizes = [2, 32], strides = [1, 1]} : vector<2x128xf32> to vector<2x32xf32>
    %112 = vector.extract_strided_slice %109 {offsets = [0, 32], sizes = [2, 32], strides = [1, 1]} : vector<2x128xf32> to vector<2x32xf32>
    %113 = vector.extract_strided_slice %110 {offsets = [0, 64], sizes = [2, 32], strides = [1, 1]} : vector<2x128xf32> to vector<2x32xf32>
    %114 = vector.extract_strided_slice %109 {offsets = [0, 96], sizes = [2, 32], strides = [1, 1]} : vector<2x128xf32> to vector<2x32xf32>
    %115 = arith.mulf %112, %81 : vector<2x32xf32>
    %116 = arith.mulf %111, %113 : vector<2x32xf32>
    %117 = arith.addf %115, %116 : vector<2x32xf32>
    %118 = math.tanh %117 : vector<2x32xf32>
    %119 = arith.mulf %114, %118 : vector<2x32xf32>
    %120 = tpu.concatenate %119, %101 in 1 : vector<2x32xf32>, vector<2x32xf32> -> vector<2x64xf32>
    %cst_32 = arith.constant dense<0.000000e+00> : vector<2x128xf32>
    %121 = tpu.matmul %120, %18, %cst_32 {dimension_numbers = #tpu.dot_dimension_numbers<[1], [0], [0], [1], [0, 0, 1, 1], [], []>} : vector<2x64xf32>, vector<64x128xf32>, vector<2x128xf32> -> vector<2x128xf32>
    %122 = arith.addf %121, %21 : vector<2x128xf32>
    %123 = arith.negf %122 : vector<2x128xf32>
    %124 = math.exp %123 : vector<2x128xf32>
    %cst_33 = arith.constant 1.000000e+00 : f32
    %125 = vector.broadcast %cst_33 : f32 to vector<2x128xf32>
    %126 = arith.addf %125, %124 : vector<2x128xf32>
    %127 = arith.divf %125, %126 : vector<2x128xf32>
    %128 = math.tanh %122 : vector<2x128xf32>
    %129 = vector.extract_strided_slice %127 {offsets = [0, 0], sizes = [2, 32], strides = [1, 1]} : vector<2x128xf32> to vector<2x32xf32>
    %130 = vector.extract_strided_slice %127 {offsets = [0, 32], sizes = [2, 32], strides = [1, 1]} : vector<2x128xf32> to vector<2x32xf32>
    %131 = vector.extract_strided_slice %128 {offsets = [0, 64], sizes = [2, 32], strides = [1, 1]} : vector<2x128xf32> to vector<2x32xf32>
    %132 = vector.extract_strided_slice %127 {offsets = [0, 96], sizes = [2, 32], strides = [1, 1]} : vector<2x128xf32> to vector<2x32xf32>
    %133 = arith.mulf %130, %99 : vector<2x32xf32>
    %134 = arith.mulf %129, %131 : vector<2x32xf32>
    %135 = arith.addf %133, %134 : vector<2x32xf32>
    %136 = math.tanh %135 : vector<2x32xf32>
    %137 = arith.mulf %132, %136 : vector<2x32xf32>
    %138 = vector.extract_strided_slice %15 {offsets = [6, 0], sizes = [2, 128], strides = [1, 1]} : vector<16x128xf32> to vector<2x128xf32>
    %cst_34 = arith.constant dense<0.000000e+00> : vector<2x128xf32>
    %139 = tpu.matmul %119, %16, %cst_34 {dimension_numbers = #tpu.dot_dimension_numbers<[1], [0], [0], [1], [0, 0, 1, 1], [], []>} : vector<2x32xf32>, vector<32x128xf32>, vector<2x128xf32> -> vector<2x128xf32>
    %140 = arith.addf %138, %139 : vector<2x128xf32>
    %141 = arith.negf %140 : vector<2x128xf32>
    %142 = math.exp %141 : vector<2x128xf32>
    %cst_35 = arith.constant 1.000000e+00 : f32
    %143 = vector.broadcast %cst_35 : f32 to vector<2x128xf32>
    %144 = arith.addf %143, %142 : vector<2x128xf32>
    %145 = arith.divf %143, %144 : vector<2x128xf32>
    %146 = math.tanh %140 : vector<2x128xf32>
    %147 = vector.extract_strided_slice %145 {offsets = [0, 0], sizes = [2, 32], strides = [1, 1]} : vector<2x128xf32> to vector<2x32xf32>
    %148 = vector.extract_strided_slice %145 {offsets = [0, 32], sizes = [2, 32], strides = [1, 1]} : vector<2x128xf32> to vector<2x32xf32>
    %149 = vector.extract_strided_slice %146 {offsets = [0, 64], sizes = [2, 32], strides = [1, 1]} : vector<2x128xf32> to vector<2x32xf32>
    %150 = vector.extract_strided_slice %145 {offsets = [0, 96], sizes = [2, 32], strides = [1, 1]} : vector<2x128xf32> to vector<2x32xf32>
    %151 = arith.mulf %148, %117 : vector<2x32xf32>
    %152 = arith.mulf %147, %149 : vector<2x32xf32>
    %153 = arith.addf %151, %152 : vector<2x32xf32>
    %154 = math.tanh %153 : vector<2x32xf32>
    %155 = arith.mulf %150, %154 : vector<2x32xf32>
    %156 = tpu.concatenate %155, %137 in 1 : vector<2x32xf32>, vector<2x32xf32> -> vector<2x64xf32>
    %cst_36 = arith.constant dense<0.000000e+00> : vector<2x128xf32>
    %157 = tpu.matmul %156, %18, %cst_36 {dimension_numbers = #tpu.dot_dimension_numbers<[1], [0], [0], [1], [0, 0, 1, 1], [], []>} : vector<2x64xf32>, vector<64x128xf32>, vector<2x128xf32> -> vector<2x128xf32>
    %158 = arith.addf %157, %21 : vector<2x128xf32>
    %159 = arith.negf %158 : vector<2x128xf32>
    %160 = math.exp %159 : vector<2x128xf32>
    %cst_37 = arith.constant 1.000000e+00 : f32
    %161 = vector.broadcast %cst_37 : f32 to vector<2x128xf32>
    %162 = arith.addf %161, %160 : vector<2x128xf32>
    %163 = arith.divf %161, %162 : vector<2x128xf32>
    %164 = math.tanh %158 : vector<2x128xf32>
    %165 = vector.extract_strided_slice %163 {offsets = [0, 0], sizes = [2, 32], strides = [1, 1]} : vector<2x128xf32> to vector<2x32xf32>
    %166 = vector.extract_strided_slice %163 {offsets = [0, 32], sizes = [2, 32], strides = [1, 1]} : vector<2x128xf32> to vector<2x32xf32>
    %167 = vector.extract_strided_slice %164 {offsets = [0, 64], sizes = [2, 32], strides = [1, 1]} : vector<2x128xf32> to vector<2x32xf32>
    %168 = vector.extract_strided_slice %163 {offsets = [0, 96], sizes = [2, 32], strides = [1, 1]} : vector<2x128xf32> to vector<2x32xf32>
    %169 = arith.mulf %166, %135 : vector<2x32xf32>
    %170 = arith.mulf %165, %167 : vector<2x32xf32>
    %171 = arith.addf %169, %170 : vector<2x32xf32>
    %172 = math.tanh %171 : vector<2x32xf32>
    %173 = arith.mulf %168, %172 : vector<2x32xf32>
    %174 = vector.extract_strided_slice %15 {offsets = [8, 0], sizes = [2, 128], strides = [1, 1]} : vector<16x128xf32> to vector<2x128xf32>
    %cst_38 = arith.constant dense<0.000000e+00> : vector<2x128xf32>
    %175 = tpu.matmul %155, %16, %cst_38 {dimension_numbers = #tpu.dot_dimension_numbers<[1], [0], [0], [1], [0, 0, 1, 1], [], []>} : vector<2x32xf32>, vector<32x128xf32>, vector<2x128xf32> -> vector<2x128xf32>
    %176 = arith.addf %174, %175 : vector<2x128xf32>
    %177 = arith.negf %176 : vector<2x128xf32>
    %178 = math.exp %177 : vector<2x128xf32>
    %cst_39 = arith.constant 1.000000e+00 : f32
    %179 = vector.broadcast %cst_39 : f32 to vector<2x128xf32>
    %180 = arith.addf %179, %178 : vector<2x128xf32>
    %181 = arith.divf %179, %180 : vector<2x128xf32>
    %182 = math.tanh %176 : vector<2x128xf32>
    %183 = vector.extract_strided_slice %181 {offsets = [0, 0], sizes = [2, 32], strides = [1, 1]} : vector<2x128xf32> to vector<2x32xf32>
    %184 = vector.extract_strided_slice %181 {offsets = [0, 32], sizes = [2, 32], strides = [1, 1]} : vector<2x128xf32> to vector<2x32xf32>
    %185 = vector.extract_strided_slice %182 {offsets = [0, 64], sizes = [2, 32], strides = [1, 1]} : vector<2x128xf32> to vector<2x32xf32>
    %186 = vector.extract_strided_slice %181 {offsets = [0, 96], sizes = [2, 32], strides = [1, 1]} : vector<2x128xf32> to vector<2x32xf32>
    %187 = arith.mulf %184, %153 : vector<2x32xf32>
    %188 = arith.mulf %183, %185 : vector<2x32xf32>
    %189 = arith.addf %187, %188 : vector<2x32xf32>
    %190 = math.tanh %189 : vector<2x32xf32>
    %191 = arith.mulf %186, %190 : vector<2x32xf32>
    %192 = tpu.concatenate %191, %173 in 1 : vector<2x32xf32>, vector<2x32xf32> -> vector<2x64xf32>
    %cst_40 = arith.constant dense<0.000000e+00> : vector<2x128xf32>
    %193 = tpu.matmul %192, %18, %cst_40 {dimension_numbers = #tpu.dot_dimension_numbers<[1], [0], [0], [1], [0, 0, 1, 1], [], []>} : vector<2x64xf32>, vector<64x128xf32>, vector<2x128xf32> -> vector<2x128xf32>
    %194 = arith.addf %193, %21 : vector<2x128xf32>
    %195 = arith.negf %194 : vector<2x128xf32>
    %196 = math.exp %195 : vector<2x128xf32>
    %cst_41 = arith.constant 1.000000e+00 : f32
    %197 = vector.broadcast %cst_41 : f32 to vector<2x128xf32>
    %198 = arith.addf %197, %196 : vector<2x128xf32>
    %199 = arith.divf %197, %198 : vector<2x128xf32>
    %200 = math.tanh %194 : vector<2x128xf32>
    %201 = vector.extract_strided_slice %199 {offsets = [0, 0], sizes = [2, 32], strides = [1, 1]} : vector<2x128xf32> to vector<2x32xf32>
    %202 = vector.extract_strided_slice %199 {offsets = [0, 32], sizes = [2, 32], strides = [1, 1]} : vector<2x128xf32> to vector<2x32xf32>
    %203 = vector.extract_strided_slice %200 {offsets = [0, 64], sizes = [2, 32], strides = [1, 1]} : vector<2x128xf32> to vector<2x32xf32>
    %204 = vector.extract_strided_slice %199 {offsets = [0, 96], sizes = [2, 32], strides = [1, 1]} : vector<2x128xf32> to vector<2x32xf32>
    %205 = arith.mulf %202, %171 : vector<2x32xf32>
    %206 = arith.mulf %201, %203 : vector<2x32xf32>
    %207 = arith.addf %205, %206 : vector<2x32xf32>
    %208 = math.tanh %207 : vector<2x32xf32>
    %209 = arith.mulf %204, %208 : vector<2x32xf32>
    %210 = vector.extract_strided_slice %15 {offsets = [10, 0], sizes = [2, 128], strides = [1, 1]} : vector<16x128xf32> to vector<2x128xf32>
    %cst_42 = arith.constant dense<0.000000e+00> : vector<2x128xf32>
    %211 = tpu.matmul %191, %16, %cst_42 {dimension_numbers = #tpu.dot_dimension_numbers<[1], [0], [0], [1], [0, 0, 1, 1], [], []>} : vector<2x32xf32>, vector<32x128xf32>, vector<2x128xf32> -> vector<2x128xf32>
    %212 = arith.addf %210, %211 : vector<2x128xf32>
    %213 = arith.negf %212 : vector<2x128xf32>
    %214 = math.exp %213 : vector<2x128xf32>
    %cst_43 = arith.constant 1.000000e+00 : f32
    %215 = vector.broadcast %cst_43 : f32 to vector<2x128xf32>
    %216 = arith.addf %215, %214 : vector<2x128xf32>
    %217 = arith.divf %215, %216 : vector<2x128xf32>
    %218 = math.tanh %212 : vector<2x128xf32>
    %219 = vector.extract_strided_slice %217 {offsets = [0, 0], sizes = [2, 32], strides = [1, 1]} : vector<2x128xf32> to vector<2x32xf32>
    %220 = vector.extract_strided_slice %217 {offsets = [0, 32], sizes = [2, 32], strides = [1, 1]} : vector<2x128xf32> to vector<2x32xf32>
    %221 = vector.extract_strided_slice %218 {offsets = [0, 64], sizes = [2, 32], strides = [1, 1]} : vector<2x128xf32> to vector<2x32xf32>
    %222 = vector.extract_strided_slice %217 {offsets = [0, 96], sizes = [2, 32], strides = [1, 1]} : vector<2x128xf32> to vector<2x32xf32>
    %223 = arith.mulf %220, %189 : vector<2x32xf32>
    %224 = arith.mulf %219, %221 : vector<2x32xf32>
    %225 = arith.addf %223, %224 : vector<2x32xf32>
    %226 = math.tanh %225 : vector<2x32xf32>
    %227 = arith.mulf %222, %226 : vector<2x32xf32>
    %228 = tpu.concatenate %227, %209 in 1 : vector<2x32xf32>, vector<2x32xf32> -> vector<2x64xf32>
    %cst_44 = arith.constant dense<0.000000e+00> : vector<2x128xf32>
    %229 = tpu.matmul %228, %18, %cst_44 {dimension_numbers = #tpu.dot_dimension_numbers<[1], [0], [0], [1], [0, 0, 1, 1], [], []>} : vector<2x64xf32>, vector<64x128xf32>, vector<2x128xf32> -> vector<2x128xf32>
    %230 = arith.addf %229, %21 : vector<2x128xf32>
    %231 = arith.negf %230 : vector<2x128xf32>
    %232 = math.exp %231 : vector<2x128xf32>
    %cst_45 = arith.constant 1.000000e+00 : f32
    %233 = vector.broadcast %cst_45 : f32 to vector<2x128xf32>
    %234 = arith.addf %233, %232 : vector<2x128xf32>
    %235 = arith.divf %233, %234 : vector<2x128xf32>
    %236 = math.tanh %230 : vector<2x128xf32>
    %237 = vector.extract_strided_slice %235 {offsets = [0, 0], sizes = [2, 32], strides = [1, 1]} : vector<2x128xf32> to vector<2x32xf32>
    %238 = vector.extract_strided_slice %235 {offsets = [0, 32], sizes = [2, 32], strides = [1, 1]} : vector<2x128xf32> to vector<2x32xf32>
    %239 = vector.extract_strided_slice %236 {offsets = [0, 64], sizes = [2, 32], strides = [1, 1]} : vector<2x128xf32> to vector<2x32xf32>
    %240 = vector.extract_strided_slice %235 {offsets = [0, 96], sizes = [2, 32], strides = [1, 1]} : vector<2x128xf32> to vector<2x32xf32>
    %241 = arith.mulf %238, %207 : vector<2x32xf32>
    %242 = arith.mulf %237, %239 : vector<2x32xf32>
    %243 = arith.addf %241, %242 : vector<2x32xf32>
    %244 = math.tanh %243 : vector<2x32xf32>
    %245 = arith.mulf %240, %244 : vector<2x32xf32>
    %246 = vector.extract_strided_slice %15 {offsets = [12, 0], sizes = [2, 128], strides = [1, 1]} : vector<16x128xf32> to vector<2x128xf32>
    %cst_46 = arith.constant dense<0.000000e+00> : vector<2x128xf32>
    %247 = tpu.matmul %227, %16, %cst_46 {dimension_numbers = #tpu.dot_dimension_numbers<[1], [0], [0], [1], [0, 0, 1, 1], [], []>} : vector<2x32xf32>, vector<32x128xf32>, vector<2x128xf32> -> vector<2x128xf32>
    %248 = arith.addf %246, %247 : vector<2x128xf32>
    %249 = arith.negf %248 : vector<2x128xf32>
    %250 = math.exp %249 : vector<2x128xf32>
    %cst_47 = arith.constant 1.000000e+00 : f32
    %251 = vector.broadcast %cst_47 : f32 to vector<2x128xf32>
    %252 = arith.addf %251, %250 : vector<2x128xf32>
    %253 = arith.divf %251, %252 : vector<2x128xf32>
    %254 = math.tanh %248 : vector<2x128xf32>
    %255 = vector.extract_strided_slice %253 {offsets = [0, 0], sizes = [2, 32], strides = [1, 1]} : vector<2x128xf32> to vector<2x32xf32>
    %256 = vector.extract_strided_slice %253 {offsets = [0, 32], sizes = [2, 32], strides = [1, 1]} : vector<2x128xf32> to vector<2x32xf32>
    %257 = vector.extract_strided_slice %254 {offsets = [0, 64], sizes = [2, 32], strides = [1, 1]} : vector<2x128xf32> to vector<2x32xf32>
    %258 = vector.extract_strided_slice %253 {offsets = [0, 96], sizes = [2, 32], strides = [1, 1]} : vector<2x128xf32> to vector<2x32xf32>
    %259 = arith.mulf %256, %225 : vector<2x32xf32>
    %260 = arith.mulf %255, %257 : vector<2x32xf32>
    %261 = arith.addf %259, %260 : vector<2x32xf32>
    %262 = math.tanh %261 : vector<2x32xf32>
    %263 = arith.mulf %258, %262 : vector<2x32xf32>
    %264 = tpu.concatenate %263, %245 in 1 : vector<2x32xf32>, vector<2x32xf32> -> vector<2x64xf32>
    %cst_48 = arith.constant dense<0.000000e+00> : vector<2x128xf32>
    %265 = tpu.matmul %264, %18, %cst_48 {dimension_numbers = #tpu.dot_dimension_numbers<[1], [0], [0], [1], [0, 0, 1, 1], [], []>} : vector<2x64xf32>, vector<64x128xf32>, vector<2x128xf32> -> vector<2x128xf32>
    %266 = arith.addf %265, %21 : vector<2x128xf32>
    %267 = arith.negf %266 : vector<2x128xf32>
    %268 = math.exp %267 : vector<2x128xf32>
    %cst_49 = arith.constant 1.000000e+00 : f32
    %269 = vector.broadcast %cst_49 : f32 to vector<2x128xf32>
    %270 = arith.addf %269, %268 : vector<2x128xf32>
    %271 = arith.divf %269, %270 : vector<2x128xf32>
    %272 = math.tanh %266 : vector<2x128xf32>
    %273 = vector.extract_strided_slice %271 {offsets = [0, 0], sizes = [2, 32], strides = [1, 1]} : vector<2x128xf32> to vector<2x32xf32>
    %274 = vector.extract_strided_slice %271 {offsets = [0, 32], sizes = [2, 32], strides = [1, 1]} : vector<2x128xf32> to vector<2x32xf32>
    %275 = vector.extract_strided_slice %272 {offsets = [0, 64], sizes = [2, 32], strides = [1, 1]} : vector<2x128xf32> to vector<2x32xf32>
    %276 = vector.extract_strided_slice %271 {offsets = [0, 96], sizes = [2, 32], strides = [1, 1]} : vector<2x128xf32> to vector<2x32xf32>
    %277 = arith.mulf %274, %243 : vector<2x32xf32>
    %278 = arith.mulf %273, %275 : vector<2x32xf32>
    %279 = arith.addf %277, %278 : vector<2x32xf32>
    %280 = math.tanh %279 : vector<2x32xf32>
    %281 = arith.mulf %276, %280 : vector<2x32xf32>
    %282 = vector.extract_strided_slice %15 {offsets = [14, 0], sizes = [2, 128], strides = [1, 1]} : vector<16x128xf32> to vector<2x128xf32>
    %cst_50 = arith.constant dense<0.000000e+00> : vector<2x128xf32>
    %283 = tpu.matmul %263, %16, %cst_50 {dimension_numbers = #tpu.dot_dimension_numbers<[1], [0], [0], [1], [0, 0, 1, 1], [], []>} : vector<2x32xf32>, vector<32x128xf32>, vector<2x128xf32> -> vector<2x128xf32>
    %284 = arith.addf %282, %283 : vector<2x128xf32>
    %285 = arith.negf %284 : vector<2x128xf32>
    %286 = math.exp %285 : vector<2x128xf32>
    %cst_51 = arith.constant 1.000000e+00 : f32
    %287 = vector.broadcast %cst_51 : f32 to vector<2x128xf32>
    %288 = arith.addf %287, %286 : vector<2x128xf32>
    %289 = arith.divf %287, %288 : vector<2x128xf32>
    %290 = math.tanh %284 : vector<2x128xf32>
    %291 = vector.extract_strided_slice %289 {offsets = [0, 0], sizes = [2, 32], strides = [1, 1]} : vector<2x128xf32> to vector<2x32xf32>
    %292 = vector.extract_strided_slice %289 {offsets = [0, 32], sizes = [2, 32], strides = [1, 1]} : vector<2x128xf32> to vector<2x32xf32>
    %293 = vector.extract_strided_slice %290 {offsets = [0, 64], sizes = [2, 32], strides = [1, 1]} : vector<2x128xf32> to vector<2x32xf32>
    %294 = vector.extract_strided_slice %289 {offsets = [0, 96], sizes = [2, 32], strides = [1, 1]} : vector<2x128xf32> to vector<2x32xf32>
    %295 = arith.mulf %292, %261 : vector<2x32xf32>
    %296 = arith.mulf %291, %293 : vector<2x32xf32>
    %297 = arith.addf %295, %296 : vector<2x32xf32>
    %298 = math.tanh %297 : vector<2x32xf32>
    %299 = arith.mulf %294, %298 : vector<2x32xf32>
    %300 = tpu.concatenate %299, %281 in 1 : vector<2x32xf32>, vector<2x32xf32> -> vector<2x64xf32>
    %cst_52 = arith.constant dense<0.000000e+00> : vector<2x128xf32>
    %301 = tpu.matmul %300, %18, %cst_52 {dimension_numbers = #tpu.dot_dimension_numbers<[1], [0], [0], [1], [0, 0, 1, 1], [], []>} : vector<2x64xf32>, vector<64x128xf32>, vector<2x128xf32> -> vector<2x128xf32>
    %302 = arith.addf %301, %21 : vector<2x128xf32>
    %303 = arith.negf %302 : vector<2x128xf32>
    %304 = math.exp %303 : vector<2x128xf32>
    %cst_53 = arith.constant 1.000000e+00 : f32
    %305 = vector.broadcast %cst_53 : f32 to vector<2x128xf32>
    %306 = arith.addf %305, %304 : vector<2x128xf32>
    %307 = arith.divf %305, %306 : vector<2x128xf32>
    %308 = math.tanh %302 : vector<2x128xf32>
    %309 = vector.extract_strided_slice %307 {offsets = [0, 0], sizes = [2, 32], strides = [1, 1]} : vector<2x128xf32> to vector<2x32xf32>
    %310 = vector.extract_strided_slice %307 {offsets = [0, 32], sizes = [2, 32], strides = [1, 1]} : vector<2x128xf32> to vector<2x32xf32>
    %311 = vector.extract_strided_slice %308 {offsets = [0, 64], sizes = [2, 32], strides = [1, 1]} : vector<2x128xf32> to vector<2x32xf32>
    %312 = vector.extract_strided_slice %307 {offsets = [0, 96], sizes = [2, 32], strides = [1, 1]} : vector<2x128xf32> to vector<2x32xf32>
    %313 = arith.mulf %310, %279 : vector<2x32xf32>
    %314 = arith.mulf %309, %311 : vector<2x32xf32>
    %315 = arith.addf %313, %314 : vector<2x32xf32>
    %316 = math.tanh %315 : vector<2x32xf32>
    %317 = arith.mulf %312, %316 : vector<2x32xf32>
    %c0_54 = arith.constant 0 : index
    %c0_55 = arith.constant 0 : index
    %c0_56 = arith.constant 0 : index
    %318 = vector.load %arg8[%c0_54, %c0_55, %c0_56] : memref<2x2x32xf32, #tpu.memory_space<vmem>>, vector<1x2x32xf32>
    %319 = vector.shape_cast %318 : vector<1x2x32xf32> to vector<2x32xf32>
    %320 = vector.shape_cast %299 : vector<2x32xf32> to vector<1x2x32xf32>
    tpu.vector_store %arg8[%c0_54, %c0_55, %c0_56], %320 {strides = array<i32>} : memref<2x2x32xf32, #tpu.memory_space<vmem>>, vector<1x2x32xf32>,
    %c0_57 = arith.constant 0 : index
    %c0_58 = arith.constant 0 : index
    %c0_59 = arith.constant 0 : index
    %321 = vector.load %arg9[%c0_57, %c0_58, %c0_59] : memref<2x2x32xf32, #tpu.memory_space<vmem>>, vector<1x2x32xf32>
    %322 = vector.shape_cast %321 : vector<1x2x32xf32> to vector<2x32xf32>
    %323 = vector.shape_cast %297 : vector<2x32xf32> to vector<1x2x32xf32>
    tpu.vector_store %arg9[%c0_57, %c0_58, %c0_59], %323 {strides = array<i32>} : memref<2x2x32xf32, #tpu.memory_space<vmem>>, vector<1x2x32xf32>,
    %c1_60 = arith.constant 1 : index
    %c0_61 = arith.constant 0 : index
    %c0_62 = arith.constant 0 : index
    %324 = vector.load %arg8[%c1_60, %c0_61, %c0_62] : memref<2x2x32xf32, #tpu.memory_space<vmem>>, vector<1x2x32xf32>
    %325 = vector.shape_cast %324 : vector<1x2x32xf32> to vector<2x32xf32>
    %326 = vector.shape_cast %317 : vector<2x32xf32> to vector<1x2x32xf32>
    tpu.vector_store %arg8[%c1_60, %c0_61, %c0_62], %326 {strides = array<i32>} : memref<2x2x32xf32, #tpu.memory_space<vmem>>, vector<1x2x32xf32>,
    %c1_63 = arith.constant 1 : index
    %c0_64 = arith.constant 0 : index
    %c0_65 = arith.constant 0 : index
    %327 = vector.load %arg9[%c1_63, %c0_64, %c0_65] : memref<2x2x32xf32, #tpu.memory_space<vmem>>, vector<1x2x32xf32>
    %328 = vector.shape_cast %327 : vector<1x2x32xf32> to vector<2x32xf32>
    %329 = vector.shape_cast %315 : vector<2x32xf32> to vector<1x2x32xf32>
    tpu.vector_store %arg9[%c1_63, %c0_64, %c0_65], %329 {strides = array<i32>} : memref<2x2x32xf32, #tpu.memory_space<vmem>>, vector<1x2x32xf32>,
    %cst_66 = arith.constant 0.000000e+00 : f32
    %330 = vector.broadcast %cst_66 : f32 to vector<2x32xf32>
    %331 = arith.maximumf %317, %330 : vector<2x32xf32>
    %c0_67 = arith.constant 0 : index
    %c0_68 = arith.constant 0 : index
    %332 = vector.load %arg4[%c0_67, %c0_68] : memref<1x33xf32, #tpu.memory_space<vmem>>, vector<1x32xf32>
    %c0_69 = arith.constant 0 : index
    %c32_70 = arith.constant 32 : index
    %333 = vector.load %arg4[%c0_69, %c32_70] : memref<1x33xf32, #tpu.memory_space<vmem>>, vector<1x1xf32>
    %334 = vector.broadcast %332 : vector<1x32xf32> to vector<2x32xf32>
    %335 = arith.mulf %331, %334 : vector<2x32xf32>
    %cst_71 = arith.constant dense<0.000000e+00> : vector<2xf32>
    %336 = vector.multi_reduction <add>, %335, %cst_71 [1] : vector<2x32xf32> to vector<2xf32>
    %337 = vector.shape_cast %336 : vector<2xf32> to vector<2x1xf32>
    %338 = vector.broadcast %333 : vector<1x1xf32> to vector<2x1xf32>
    %339 = arith.addf %337, %338 : vector<2x1xf32>
    %c0_72 = arith.constant 0 : index
    %c0_73 = arith.constant 0 : index
    %340 = vector.load %arg7[%c0_72, %c0_73] : memref<2x1xf32, #tpu.memory_space<vmem>>, vector<2x1xf32>
    tpu.vector_store %arg7[%c0_72, %c0_73], %339 {strides = array<i32>} : memref<2x1xf32, #tpu.memory_space<vmem>>, vector<2x1xf32>,
    return
  }
}

</mosaic_0001>

<bundles_post_ra>
// kernel: lstm_net_forward.1
= control target key start
LH: loop header
LB: loop body
LE: loop exit
PB: predicated region body
PF: predicated region fallthrough
CT: control target
= control target key end

     0   :  { %15 = vsyncpa [#allocation3], 0  ;;  %s2025_s0 = inlined_call_operand.vmem [shape: f32[16,2], index: 0, kind: input, shape index: {}]   ;;  %s2026_s1 = inlined_call_operand.hbm [shape: f32[34,128], index: 1, kind: input, shape index: {}]   ;;  %s2027_s2 = inlined_call_operand.hbm [shape: f32[1,64,128], index: 2, kind: input, shape index: {}]   ;;  %s2028_s3 = inlined_call_operand.vmem [shape: f32[2,128], index: 3, kind: input, shape index: {}]   ;;  %s2029_s4 = inlined_call_operand.vmem [shape: f32[1,33], index: 4, kind: input, shape index: {}]   ;;  %s2030_s5 = inlined_call_operand.vmem [shape: f32[2,2,32], index: 5, kind: input, shape index: {}]   ;;  %s2031_s6 = inlined_call_operand.vmem [shape: f32[2,2,32], index: 6, kind: input, shape index: {}]   ;;  %s2032_s7 = inlined_call_operand.vmem [shape: f32[2,1], index: 7, kind: output, shape index: {0}]   ;;  %s2033_s8 = inlined_call_operand.hbm [shape: f32[2,2,32], index: 8, kind: output, shape index: {1}]   ;;  %s2034_s9 = inlined_call_operand.hbm [shape: f32[2,2,32], index: 9, kind: output, shape index: {2}]  }
   0x1   :  { %16 = vsyncpa [#allocation6], 0 }
   0x2   :  { %17 = vsyncpa [#allocation4], 0 }
   0x3   :  { %18 = vsyncpa [#allocation9], 0  ;;  %s25_s11 = sshll.u32 %s2026_s1, 4  ;;  %s1599_s12 = smov [#allocation2]   ;;  %s26_s11 = int_to_ptr.hbm [resolvable:$true] %s25_s11 }
   0x4   :  { %s27_s13 = sshll.u32 %s1599_s12, 4  ;;  %s38_s16 = sshll.u32 %s2027_s2, 4  ;;  %s28_s13 = int_to_ptr.vmem [resolvable:$true] %s27_s13  ;;  %s39_s16 = int_to_ptr.hbm [resolvable:$true] %s38_s16 }
   0x5   :  { %s1600_s17 = smov 128   ;;  %s1601_s18 = smov 8  }
   0x6   :  { %33 = dma.hbm_to_vmem [thread:$0]  %s26_s11, 640, %s28_s13, [#allocation3], %s1600_s17, %s1600_s17, %s1601_s18  }
   0x7   :  { %s1602_s19 = smov [#allocation5]  }
   0x8   :  { %s40_s20 = sshll.u32 %s1602_s19, 4  ;;  %s41_s20 = int_to_ptr.vmem [resolvable:$true] %s40_s20 }
   0x9   :  { %46 = dma.hbm_to_vmem [thread:$0]  %s39_s16, 1024, %s41_s20, [#allocation6], %s1600_s17, %s1600_s17, %s1601_s18  }
   0xa   :  { %1591 = dma.done.wait [#allocation3], 640  }
   0xb   :  { %1592 = vsyncadd [#allocation3], 4294966656 }
   0xc   :  { %1593 = dma.done.wait [#allocation6], 1024  }
   0xd   :  { %1594 = vsyncadd [#allocation6], 4294966272  ;;  %v1603_v0 = vmov 0   ;;  %v1604_v1 = vmov 1   ;;  %v1667_v2 = vld [vmem:[#allocation2 + $0x18] sm:$0xff]  ;;  %v63_v3 = vld [vmem:[%s2025_s0] sm:$0xff] }
   0xe   :  { %1357 = vset.pattern.permute.xlu0 %v1603_v0  ;;  %1359 = vset.pattern.permute.xlu1 %v1603_v0  ;;  %v1672_v4 = vld [vmem:[#allocation2 + $0x10] sm:$0xff]  ;;  %v1675_v5 = vld [vmem:[#allocation2 + $0x8] sm:$0xff]  ;;  %v1679_v6 = vld [vmem:[#allocation2] sm:$0xff]  ;;  %vm117_vm0 = vcmask 261120   ;;  %s1605_s25 = smov 64   ;;  %s1606_s28 = smov 32  }
   0xf   :  { %1360 = vset.pattern.permute.xlu2 %v1604_v1  ;;  %133 = vmatpush.msra.mxu0 %v1667_v2  ;;  %v111_v7 = vld [vmem:[%s2030_s5] sm:$0x3]  ;;  %v1311_v41 = vld [vmem:[%s2030_s5 + $0x2] sm:$0x3]  ;;  %v1728_v43 = vld [vmem:[#allocation5 + $0x30] sm:$0xff]  ;;  %vm192_vm5 = vcmask 523264  }
  0x10   :  { %70 = vperm.xlu0 %1357, %v63_v3   ;;  %271 = vmatpush.msra.mxu2 %v1667_v2  ;;  %v1698_v9 = vld [vmem:[#allocation2 + $0x20] ss:$0 sm:$0xff]  ;;  %v1700_v10 = vld [vmem:[#allocation2 + $0x21] ss:$0 sm:$0xff]  ;;  %v1732_v44 = vld [vmem:[#allocation5 + $0x28] sm:$0xff]  ;;  %s1607_s16 = smov 96  }
  0x11   :  { %134 = vmatpush.msra.mxu0 %v1672_v4  ;;  %v1705_v12 = vld [vmem:[%s2028_s3] ss:$0 sm:$0xff]  ;;  %v1737_v45 = vld [vmem:[#allocation5 + $0x20] sm:$0xff]  ;;  %v1747_v47 = vld [vmem:[#allocation5 + $0x10] sm:$0xff]  ;;  %s1277_s20 = sshll.u32 %s2033_s8, 4  ;;  %s1609_s1 = smov [#allocation8]   ;;  %s1278_s20 = int_to_ptr.hbm [resolvable:$true] %s1277_s20 }
  0x12   :  { %272 = vmatpush.msra.mxu2 %v1672_v4  ;;  %v114_v20 = vld [vmem:[%s2031_s6] sm:$0x3]  ;;  %v1752_v48 = vld [vmem:[#allocation5 + $0x8] sm:$0xff]  ;;  %v1763_v51 = vld [vmem:[#allocation5] sm:$0xff]  ;;  %s1288_s2 = sshll.u32 %s1609_s1, 4  ;;  %s1610_s21 = smov 2   ;;  %s1289_s2 = int_to_ptr.vmem [resolvable:$true] %s1288_s2 }
  0x13   :  { %135 = vmatpush.msra.mxu0 %v1675_v5  ;;  %v1726_v42 = vld [vmem:[#allocation5 + $0x38] sm:$0xff]  ;;  %s1290_s24 = sshll.u32 %s2034_s9, 4  ;;  %s1291_s24 = int_to_ptr.hbm [resolvable:$true] %s1290_s24 }
  0x14   :  { %273 = vmatpush.msra.mxu2 %v1675_v5  ;;  %204 = vmatpush.msra.mxu1 %v1726_v42  ;;  %v1742_v46 = vld [vmem:[#allocation5 + $0x18] sm:$0xff] }
  0x15   :  { %136 = vmatpush.msra.mxu0 %v1679_v6  ;;  %345 = vmatpush.msra.mxu3 %v1726_v42  ;;  %v1312_v52 = vld [vmem:[%s2031_s6 + $0x2] sm:$0x3]  ;;  %v1802_v56 = vld [vmem:[%s2028_s3 + $0x1] ss:$0 sm:$0xff] }
  0x16   :  { %1313 = vmatmul.msk.f32.vlgmr.msra.gmra.mxu0 %vm117_vm0, %v111_v7  ;;  %274 = vmatpush.msra.mxu2 %v1679_v6 }
  0x17   :  { %411 = vmatpush.msrb.mxu0 %v1667_v2  ;;  %205 = vmatpush.msra.mxu1 %v1728_v43 }
  0x18   :  { %1358 = vset.pattern.permute.xlu0 %v1604_v1  ;;  %485 = vmatpush.msrb.mxu2 %v1726_v42 }
  0x19   :  { %85 = vperm.xlu0 %1358, %v63_v3   ;;  %412 = vmatpush.msrb.mxu0 %v1672_v4 }
  0x1a   :  { %346 = vmatpush.msra.mxu3 %v1728_v43  ;;  %486 = vmatpush.msrb.mxu2 %v1728_v43 }
  0x1b   :  { %413 = vmatpush.msrb.mxu0 %v1675_v5  ;;  %206 = vmatpush.msra.mxu1 %v1732_v44 }
  0x1c   :  { %347 = vmatpush.msra.mxu3 %v1732_v44  ;;  %487 = vmatpush.msrb.mxu2 %v1732_v44 }
  0x1d   :  { %414 = vmatpush.msrb.mxu0 %v1679_v6  ;;  %207 = vmatpush.msra.mxu1 %v1737_v45 }
  0x1e   :  { %348 = vmatpush.msra.mxu3 %v1737_v45  ;;  %488 = vmatpush.msrb.mxu2 %v1737_v45 }
  0x1f   :  { %551 = vmatpush.msra.mxu0 %v1667_v2  ;;  %208 = vmatpush.msra.mxu1 %v1742_v46 }
  0x20   :  { %349 = vmatpush.msra.mxu3 %v1742_v46  ;;  %489 = vmatpush.msrb.mxu2 %v1742_v46 }
  0x21   :  { %552 = vmatpush.msra.mxu0 %v1672_v4  ;;  %209 = vmatpush.msra.mxu1 %v1747_v47 }
  0x22   :  { %350 = vmatpush.msra.mxu3 %v1747_v47  ;;  %490 = vmatpush.msrb.mxu2 %v1747_v47 }
  0x23   :  { %553 = vmatpush.msra.mxu0 %v1675_v5  ;;  %210 = vmatpush.msra.mxu1 %v1752_v48 }
  0x24   :  { %351 = vmatpush.msra.mxu3 %v1752_v48  ;;  %491 = vmatpush.msrb.mxu2 %v1752_v48 }
  0x25   :  { %554 = vmatpush.msra.mxu0 %v1679_v6  ;;  %211 = vmatpush.msra.mxu1 %v1763_v51 }
  0x26   :  { %352 = vmatpush.msra.mxu3 %v1763_v51  ;;  %492 = vmatpush.msrb.mxu2 %v1763_v51 }
  0x27   :  { %625 = vmatpush.msrb.mxu1 %v1726_v42 }
  0x28   :  { %691 = vmatpush.msrb.mxu3 %v1667_v2 }
  0x29   :  { %626 = vmatpush.msrb.mxu1 %v1728_v43 }
  0x2a   :  { %692 = vmatpush.msrb.mxu3 %v1672_v4 }
  0x2b   :  { %627 = vmatpush.msrb.mxu1 %v1732_v44 }
  0x2c   :  { %693 = vmatpush.msrb.mxu3 %v1675_v5 }
  0x2d   :  { %628 = vmatpush.msrb.mxu1 %v1737_v45 }
  0x2e   :  { %694 = vmatpush.msrb.mxu3 %v1679_v6 }
  0x2f   :  { %629 = vmatpush.msrb.mxu1 %v1742_v46 }
  0x31   :  { %630 = vmatpush.msrb.mxu1 %v1747_v47 }
  0x33   :  { %631 = vmatpush.msrb.mxu1 %v1752_v48 }
  0x35   :  { %632 = vmatpush.msrb.mxu1 %v1763_v51 }
  0x82   :  { %v71_v8 = vpop.permute.xlu0 %70 }
  0x83   :  { %v79_v13 = vmul.f32 %v1698_v9, %v71_v8 }
  0x85   :  { %v81_v15 = vadd.f32 %v1705_v12, %v79_v13 }
  0x8b   :  { %v86_v11 = vpop.permute.xlu0 %85 }
  0x8c   :  { %v93_v14 = vmul.f32 %v1700_v10, %v86_v11 }
  0x8e   :  { %v1710_v16 = vadd.f32 %v93_v14, %v81_v15 }
  0x93   :  { %v138_v17 = vpop.f32.mrf.mxu0 }
  0x94   :  { %v141_v18 = vadd.f32 %v138_v17, %v1710_v16 }
  0x96   :  { %1366 = vtanh.f32 %v141_v18  ;;  %v1314_v21 = vmul.f32 -1.442695, %v141_v18 }
  0x98   :  { %1368 = vpow2.f32 %v1314_v21 }
  0x9c   :  { %v1367_v19 = vpop.eup %1366 }
  0x9d   :  { %168 = vrot.lane.b32.xlu1 %v1367_v19, %s1605_s25 }
  0x9e   :  { %v1369_v22 = vpop.eup %1368 }
  0x9f   :  { %v145_v23 = vadd.f32 1.0, %v1369_v22 }
  0xa1   :  { %1370 = vrcp.f32 %v145_v23  ;;  %v157_v29 = vand.u32 2147483648, %v145_v23  ;;  %vm151_vm2 = vweird.f32 %v145_v23  ;;  %v155_v30 = vand.u32 2147483647, %v145_v23 }
  0xa3   :  { %v158_v32 = vor.u32 1.1754944e-38, %v157_v29  ;;  %vm156_vm4 = vcmp.eq.f32.partialorder %v155_v30, 8.507059e+37 }
  0xa5   :  { %163 = vrot.lane.b32.xlu1 %v114_v20, %s1606_s28 }
  0xa7   :  { %v1371_v24 = vpop.eup %1370 }
  0xa8   :  { %v147_v25 = vmul.f32 %v1371_v24, %v145_v23  ;;  %vm152_vm1 = vweird.f32 %v1371_v24 }
  0xa9   :  { %vm153_vm3 = vmor %vm151_vm2, %vm152_vm1 }
  0xaa   :  { %v148_v26 = vsub.f32 1.0, %v147_v25 }
  0xac   :  { %v149_v27 = vmul.f32 %v1371_v24, %v148_v26 }
  0xae   :  { %v150_v28 = vadd.f32 %v1371_v24, %v149_v27 }
  0xb0   :  { %v154_v31 = vsel %vm153_vm3, %v1371_v24, %v150_v28 }
  0xb1   :  { %v159_v34 = vsel %vm156_vm4, %v158_v32, %v154_v31 }
 0x10f   :  { %v169_v33 = vpop.permute.xlu1 %168 }
 0x110   :  { %v171_v35 = vmul.f32 %v169_v33, %v159_v34 }
 0x112   :  { %173 = vrot.lane.b32.xlu2 %v171_v35, %s1606_s28 }
 0x117   :  { %v164_v36 = vpop.permute.xlu1 %163 }
 0x118   :  { %v166_v37 = vmul.f32 %v164_v36, %v159_v34 }
 0x16c   :  { %v174_v38 = vpop.permute.xlu2 %173 }
 0x16d   :  { %v1719_v39 = vadd.f32 %v174_v38, %v166_v37 }
 0x16f   :  { %1372 = vtanh.f32 %v1719_v39 }
 0x175   :  { %v1373_v40 = vpop.eup %1372 }
 0x176   :  { %179 = vrot.lane.b32.xlu2 %v1373_v40, %s1605_s25 }
 0x17e   :  { %188 = vrot.lane.b32.xlu2 %v1311_v41, %s1606_s28 }
 0x186   :  { %237 = vrot.lane.b32.xlu2 %v1312_v52, %s1606_s28 }
 0x1d0   :  { %v180_v49 = vpop.permute.xlu2 %179 }
 0x1d1   :  { %v182_v50 = vmul.f32 %v180_v49, %v159_v34 }
 0x1d3   :  { %184 = vrot.lane.b32.xlu1 %v182_v50, %s1606_s28  ;;  %v304_v50 = vrot.slane %v1719_v39, 6 }
 0x1d8   :  { %v189_v53 = vpop.permute.xlu2 %188 }
 0x1e0   :  { %v238_v38 = vpop.permute.xlu2 %237 }
 0x245   :  { %v185_v54 = vpop.permute.xlu1 %184 }
 0x246   :  { %1317 = vmatmul.msk.f32.vlgmr.msra.gmra.mxu2 %vm117_vm0, %v185_v54  ;;  %v191_v55 = vsel %vm117_vm0, %v185_v54, %v189_v53 }
 0x247   :  { %1315 = vmatmul.msk.f32.vlgmr.msra.gmra.mxu1 %vm192_vm5, %v191_v55  ;;  %823 = vmatpush.msra.mxu2 %v1667_v2 }
 0x248   :  { %1177 = vmatpush.msra.mxu1 %v1726_v42 }
 0x249   :  { %824 = vmatpush.msra.mxu2 %v1672_v4 }
 0x24a   :  { %1178 = vmatpush.msra.mxu1 %v1728_v43 }
 0x24b   :  { %825 = vmatpush.msra.mxu2 %v1675_v5 }
 0x24c   :  { %1179 = vmatpush.msra.mxu1 %v1732_v44 }
 0x24d   :  { %826 = vmatpush.msra.mxu2 %v1679_v6 }
 0x24e   :  { %1180 = vmatpush.msra.mxu1 %v1737_v45 }
 0x250   :  { %1181 = vmatpush.msra.mxu1 %v1742_v46 }
 0x252   :  { %1182 = vmatpush.msra.mxu1 %v1747_v47 }
 0x254   :  { %1183 = vmatpush.msra.mxu1 %v1752_v48 }
 0x256   :  { %1184 = vmatpush.msra.mxu1 %v1763_v51 }
 0x2c4   :  { %v213_v57 = vpop.f32.mrf.mxu1 }
 0x2c5   :  { %v214_v58 = vadd.f32 %v1802_v56, %v213_v57 }
 0x2c7   :  { %1374 = vtanh.f32 %v214_v58  ;;  %v1316_v0 = vmul.f32 -1.442695, %v214_v58 }
 0x2c9   :  { %v276_v59 = vpop.f32.mrf.mxu2 }
 0x2ca   :  { %v280_v60 = vrot.slane %v276_v59, 6 }
 0x2cc   :  { %v282_v61 = vadd.f32 %v280_v60, %v1710_v16 }
 0x2cd   :  { %v1375_v62 = vpop.eup %1374 }
 0x2ce   :  { %1376 = vtanh.f32 %v282_v61  ;;  %242 = vrot.lane.b32.xlu0 %v1375_v62, %s1605_s25  ;;  %v1318_v1 = vmul.f32 -1.442695, %v282_v61 }
 0x2cf   :  { %1378 = vpow2.f32 %v1316_v0 }
 0x2d0   :  { %1380 = vpow2.f32 %v1318_v1 }
 0x2d4   :  { %v1377_v63 = vpop.eup %1376 }
 0x2d5   :  { %308 = vrot.lane.b32.xlu1 %v1377_v63, %s1605_s25  ;;  %v1379_v3 = vpop.eup %1378 }
 0x2d6   :  { %v219_v7 = vadd.f32 1.0, %v1379_v3  ;;  %v1381_v8 = vpop.eup %1380 }
 0x2d7   :  { %v286_v11 = vadd.f32 1.0, %v1381_v8 }
 0x2d8   :  { %1382 = vrcp.f32 %v219_v7  ;;  %v231_v22 = vand.u32 2147483648, %v219_v7  ;;  %vm225_vm7 = vweird.f32 %v219_v7  ;;  %v229_v23 = vand.u32 2147483647, %v219_v7 }
 0x2d9   :  { %1384 = vrcp.f32 %v286_v11  ;;  %v298_v31 = vand.u32 2147483648, %v286_v11  ;;  %vm292_vm11 = vweird.f32 %v286_v11  ;;  %v296_v32 = vand.u32 2147483647, %v286_v11 }
 0x2da   :  { %v232_v26 = vor.u32 1.1754944e-38, %v231_v22  ;;  %vm230_vm9 = vcmp.eq.f32.partialorder %v229_v23, 8.507059e+37 }
 0x2db   :  { %v299_v34 = vor.u32 1.1754944e-38, %v298_v31  ;;  %vm297_vm13 = vcmp.eq.f32.partialorder %v296_v32, 8.507059e+37 }
 0x2de   :  { %v1383_v13 = vpop.eup %1382 }
 0x2df   :  { %v221_v14 = vmul.f32 %v1383_v13, %v219_v7  ;;  %v1385_v15 = vpop.eup %1384  ;;  %vm226_vm6 = vweird.f32 %v1383_v13 }
 0x2e0   :  { %v288_v18 = vmul.f32 %v1385_v15, %v286_v11  ;;  %vm227_vm8 = vmor %vm225_vm7, %vm226_vm6  ;;  %vm293_vm10 = vweird.f32 %v1385_v15 }
 0x2e1   :  { %v222_v17 = vsub.f32 1.0, %v221_v14  ;;  %vm294_vm12 = vmor %vm292_vm11, %vm293_vm10 }
 0x2e2   :  { %v289_v20 = vsub.f32 1.0, %v288_v18 }
 0x2e3   :  { %v223_v19 = vmul.f32 %v1383_v13, %v222_v17 }
 0x2e4   :  { %v290_v24 = vmul.f32 %v1385_v15, %v289_v20 }
 0x2e5   :  { %v224_v21 = vadd.f32 %v1383_v13, %v223_v19 }
 0x2e6   :  { %v291_v29 = vadd.f32 %v1385_v15, %v290_v24 }
 0x2e7   :  { %v228_v25 = vsel %vm227_vm8, %v1383_v13, %v224_v21 }
 0x2e8   :  { %v233_v27 = vsel %vm230_vm9, %v232_v26, %v228_v25  ;;  %v295_v33 = vsel %vm294_vm12, %v1385_v15, %v291_v29 }
 0x2e9   :  { %v300_v36 = vsel %vm297_vm13, %v299_v34, %v295_v33  ;;  %v240_v40 = vmul.f32 %v238_v38, %v233_v27 }
 0x2ea   :  { %v306_v52 = vmul.f32 %v304_v50, %v300_v36 }
 0x340   :  { %v243_v28 = vpop.permute.xlu0 %242 }
 0x341   :  { %v245_v30 = vmul.f32 %v243_v28, %v233_v27 }
 0x343   :  { %247 = vrot.lane.b32.xlu0 %v245_v30, %s1606_s28 }
 0x347   :  { %v309_v35 = vpop.permute.xlu1 %308 }
 0x348   :  { %v311_v37 = vmul.f32 %v309_v35, %v300_v36 }
 0x34a   :  { %313 = vrot.lane.b32.xlu1 %v311_v37, %s1606_s28 }
 0x3b5   :  { %v248_v41 = vpop.permute.xlu0 %247 }
 0x3b6   :  { %v1810_v49 = vadd.f32 %v248_v41, %v240_v40 }
 0x3b8   :  { %1386 = vtanh.f32 %v1810_v49 }
 0x3bc   :  { %v314_v53 = vpop.permute.xlu1 %313 }
 0x3bd   :  { %v1814_v54 = vadd.f32 %v314_v53, %v306_v52 }
 0x3be   :  { %v1387_v55 = vpop.eup %1386 }
 0x3bf   :  { %1388 = vtanh.f32 %v1814_v54  ;;  %253 = vrot.lane.b32.xlu2 %v1387_v55, %s1605_s25 }
 0x3c5   :  { %v1389_v57 = vpop.eup %1388 }
 0x3c6   :  { %319 = vrot.lane.b32.xlu0 %v1389_v57, %s1605_s25 }
 0x419   :  { %v254_v58 = vpop.permute.xlu2 %253 }
 0x41a   :  { %v256_v59 = vmul.f32 %v254_v58, %v233_v27 }
 0x41c   :  { %v328_v60 = vrot.slane %v256_v59, 6 }
 0x41e   :  { %329 = vrot.lane.b32.xlu2 %v328_v60, %s1605_s25 }
 0x438   :  { %v320_v61 = vpop.permute.xlu0 %319 }
 0x439   :  { %v322_v62 = vmul.f32 %v320_v61, %v300_v36 }
 0x43b   :  { %v394_v39 = vrot.slane %v322_v62, 2  ;;  %324 = vrot.lane.b32.xlu1 %v322_v62, %s1606_s28 }
 0x43d   :  { %395 = vrot.lane.b32.xlu0 %v394_v39, %s1606_s28 }
 0x478   :  { %v330_v63 = vpop.permute.xlu2 %329 }
 0x4ad   :  { %v325_v0 = vpop.permute.xlu1 %324 }
 0x4ae   :  { %v332_v1 = vsel %vm117_vm0, %v325_v0, %v330_v63  ;;  %v444_v0 = vrot.slane %v1814_v54, 6 }
 0x4af   :  { %v334_v3 = vrot.slane %v332_v1, 2  ;;  %v396_v7 = vpop.permute.xlu0 %395 }
 0x4b0   :  { %1321 = vmatmul.msk.f32.vlgmr.msrb.gmra.mxu0 %vm117_vm0, %v396_v7 }
 0x4b1   :  { %1319 = vmatmul.msk.f32.vlgmr.msra.gmra.mxu3 %vm192_vm5, %v334_v3  ;;  %760 = vmatpush.msrb.mxu0 %v1726_v42 }
 0x4b2   :  { %897 = vmatpush.msra.mxu3 %v1726_v42 }
 0x4b3   :  { %761 = vmatpush.msrb.mxu0 %v1728_v43 }
 0x4b4   :  { %898 = vmatpush.msra.mxu3 %v1728_v43 }
 0x4b5   :  { %762 = vmatpush.msrb.mxu0 %v1732_v44 }
 0x4b6   :  { %899 = vmatpush.msra.mxu3 %v1732_v44 }
 0x4b7   :  { %763 = vmatpush.msrb.mxu0 %v1737_v45 }
 0x4b8   :  { %900 = vmatpush.msra.mxu3 %v1737_v45 }
 0x4b9   :  { %764 = vmatpush.msrb.mxu0 %v1742_v46 }
 0x4ba   :  { %901 = vmatpush.msra.mxu3 %v1742_v46 }
 0x4bb   :  { %765 = vmatpush.msrb.mxu0 %v1747_v47 }
 0x4bc   :  { %902 = vmatpush.msra.mxu3 %v1747_v47 }
 0x4bd   :  { %766 = vmatpush.msrb.mxu0 %v1752_v48 }
 0x4be   :  { %903 = vmatpush.msra.mxu3 %v1752_v48 }
 0x4bf   :  { %767 = vmatpush.msrb.mxu0 %v1763_v51 }
 0x4c0   :  { %904 = vmatpush.msra.mxu3 %v1763_v51 }
 0x52d   :  { %v416_v8 = vpop.f32.mrf.mxu0 }
 0x52e   :  { %v420_v11 = vrot.slane %v416_v8, 4 }
 0x530   :  { %v422_v13 = vadd.f32 %v420_v11, %v1710_v16 }
 0x532   :  { %1390 = vtanh.f32 %v422_v13  ;;  %v1322_v22 = vmul.f32 -1.442695, %v422_v13 }
 0x534   :  { %v354_v14 = vpop.f32.mrf.mxu3 }
 0x535   :  { %v355_v15 = vadd.f32 %v1802_v56, %v354_v14 }
 0x537   :  { %1392 = vtanh.f32 %v355_v15  ;;  %v1320_v19 = vmul.f32 -1.442695, %v355_v15 }
 0x538   :  { %v1391_v17 = vpop.eup %1390 }
 0x539   :  { %448 = vrot.lane.b32.xlu1 %v1391_v17, %s1605_s25  ;;  %1394 = vpow2.f32 %v1320_v19 }
 0x53d   :  { %v1393_v18 = vpop.eup %1392 }
 0x53e   :  { %379 = vrot.lane.b32.xlu2 %v1393_v18, %s1605_s25 }
 0x53f   :  { %v1395_v20 = vpop.eup %1394 }
 0x540   :  { %v360_v21 = vadd.f32 1.0, %v1395_v20 }
 0x542   :  { %1396 = vrcp.f32 %v360_v21  ;;  %v372_v30 = vand.u32 2147483648, %v360_v21  ;;  %vm366_vm15 = vweird.f32 %v360_v21  ;;  %v370_v31 = vand.u32 2147483647, %v360_v21 }
 0x543   :  { %1398 = vpow2.f32 %v1322_v22 }
 0x544   :  { %v373_v34 = vor.u32 1.1754944e-38, %v372_v30  ;;  %vm371_vm2 = vcmp.eq.f32.partialorder %v370_v31, 8.507059e+37 }
 0x548   :  { %v1397_v23 = vpop.eup %1396 }
 0x549   :  { %v362_v24 = vmul.f32 %v1397_v23, %v360_v21  ;;  %v1399_v25 = vpop.eup %1398  ;;  %vm367_vm14 = vweird.f32 %v1397_v23 }
 0x54a   :  { %v426_v27 = vadd.f32 1.0, %v1399_v25  ;;  %vm368_vm1 = vmor %vm366_vm15, %vm367_vm14 }
 0x54b   :  { %v363_v26 = vsub.f32 1.0, %v362_v24 }
 0x54c   :  { %1400 = vrcp.f32 %v426_v27  ;;  %v438_v52 = vand.u32 2147483648, %v426_v27  ;;  %vm432_vm4 = vweird.f32 %v426_v27  ;;  %v436_v53 = vand.u32 2147483647, %v426_v27 }
 0x54d   :  { %v364_v28 = vmul.f32 %v1397_v23, %v363_v26 }
 0x54e   :  { %v439_v57 = vor.u32 1.1754944e-38, %v438_v52  ;;  %vm437_vm7 = vcmp.eq.f32.partialorder %v436_v53, 8.507059e+37 }
 0x54f   :  { %v365_v29 = vadd.f32 %v1397_v23, %v364_v28 }
 0x551   :  { %v369_v33 = vsel %vm368_vm1, %v1397_v23, %v365_v29 }
 0x552   :  { %v1401_v32 = vpop.eup %1400  ;;  %v374_v36 = vsel %vm371_vm2, %v373_v34, %v369_v33 }
 0x553   :  { %v428_v37 = vmul.f32 %v1401_v32, %v426_v27  ;;  %vm433_vm3 = vweird.f32 %v1401_v32  ;;  %v377_v61 = vmul.f32 %v374_v36, %v1810_v49 }
 0x554   :  { %vm434_vm6 = vmor %vm432_vm4, %vm433_vm3 }
 0x555   :  { %v429_v40 = vsub.f32 1.0, %v428_v37 }
 0x557   :  { %v430_v41 = vmul.f32 %v1401_v32, %v429_v40 }
 0x559   :  { %v431_v50 = vadd.f32 %v1401_v32, %v430_v41 }
 0x55b   :  { %v435_v55 = vsel %vm434_vm6, %v1401_v32, %v431_v50 }
 0x55c   :  { %v440_v59 = vsel %vm437_vm7, %v439_v57, %v435_v55 }
 0x55d   :  { %v446_v1 = vmul.f32 %v444_v0, %v440_v59 }
 0x598   :  { %v380_v35 = vpop.permute.xlu2 %379 }
 0x599   :  { %v382_v38 = vmul.f32 %v380_v35, %v374_v36 }
 0x59b   :  { %384 = vrot.lane.b32.xlu1 %v382_v38, %s1606_s28 }
 0x5ab   :  { %v449_v58 = vpop.permute.xlu1 %448 }
 0x5ac   :  { %v451_v60 = vmul.f32 %v449_v58, %v440_v59 }
 0x5ae   :  { %453 = vrot.lane.b32.xlu0 %v451_v60, %s1606_s28 }
 0x60d   :  { %v385_v62 = vpop.permute.xlu1 %384 }
 0x60e   :  { %v1848_v39 = vadd.f32 %v385_v62, %v377_v61 }
 0x610   :  { %1402 = vtanh.f32 %v1848_v39 }
 0x616   :  { %v1403_v63 = vpop.eup %1402 }
 0x617   :  { %390 = vrot.lane.b32.xlu0 %v1403_v63, %s1605_s25 }
 0x620   :  { %v454_v3 = vpop.permute.xlu0 %453 }
 0x621   :  { %v1853_v7 = vadd.f32 %v454_v3, %v446_v1 }
 0x623   :  { %1404 = vtanh.f32 %v1853_v7  ;;  %v584_v3 = vrot.slane %v1853_v7, 6 }
 0x629   :  { %v1405_v8 = vpop.eup %1404 }
 0x62a   :  { %459 = vrot.lane.b32.xlu2 %v1405_v8, %s1605_s25 }
 0x684   :  { %v460_v49 = vpop.permute.xlu2 %459 }
 0x685   :  { %v462_v11 = vmul.f32 %v460_v49, %v440_v59 }
 0x687   :  { %v534_v13 = vrot.slane %v462_v11, 4  ;;  %464 = vrot.lane.b32.xlu2 %v462_v11, %s1606_s28 }
 0x689   :  { %535 = vrot.lane.b32.xlu1 %v534_v13, %s1606_s28  ;;  %v391_v14 = vpop.permute.xlu0 %390 }
 0x68a   :  { %v393_v15 = vmul.f32 %v391_v14, %v374_v36 }
 0x68c   :  { %v468_v17 = vrot.slane %v393_v15, 4 }
 0x68e   :  { %469 = vrot.lane.b32.xlu0 %v468_v17, %s1605_s25 }
 0x6e1   :  { %v465_v18 = vpop.permute.xlu2 %464 }
 0x6fb   :  { %v536_v54 = vpop.permute.xlu1 %535 }
 0x6fc   :  { %1325 = vmatmul.msk.f32.vlgmr.msra.gmra.mxu0 %vm117_vm0, %v536_v54 }
 0x6fd   :  { %1103 = vmatpush.msra.mxu0 %v1667_v2 }
 0x6ff   :  { %1104 = vmatpush.msra.mxu0 %v1672_v4 }
 0x700   :  { %v470_v19 = vpop.permute.xlu0 %469 }
 0x701   :  { %v472_v20 = vsel %vm117_vm0, %v465_v18, %v470_v19  ;;  %1105 = vmatpush.msra.mxu0 %v1675_v5  ;;  %v64_v18 = vld [vmem:[%s2025_s0 + $0x8] sm:$0xff] }
 0x702   :  { %v474_v21 = vrot.slane %v472_v20, 4 }
 0x703   :  { %1106 = vmatpush.msra.mxu0 %v1679_v6 }
 0x704   :  { %1323 = vmatmul.msk.f32.vlgmr.msrb.gmra.mxu2 %vm192_vm5, %v474_v21 }
 0x705   :  { %1037 = vmatpush.msrb.mxu2 %v1726_v42 }
 0x707   :  { %1038 = vmatpush.msrb.mxu2 %v1728_v43 }
 0x709   :  { %1039 = vmatpush.msrb.mxu2 %v1732_v44 }
 0x70b   :  { %1040 = vmatpush.msrb.mxu2 %v1737_v45 }
 0x70d   :  { %1041 = vmatpush.msrb.mxu2 %v1742_v46 }
 0x70f   :  { %1042 = vmatpush.msrb.mxu2 %v1747_v47 }
 0x711   :  { %1043 = vmatpush.msrb.mxu2 %v1752_v48 }
 0x713   :  { %1044 = vmatpush.msrb.mxu2 %v1763_v51 }
 0x779   :  { %v556_v22 = vpop.f32.mrf.mxu0 }
 0x77a   :  { %v560_v23 = vrot.slane %v556_v22, 2 }
 0x77c   :  { %v562_v24 = vadd.f32 %v560_v23, %v1710_v16 }
 0x77e   :  { %1406 = vtanh.f32 %v562_v24  ;;  %v1326_v48 = vmul.f32 -1.442695, %v562_v24 }
 0x784   :  { %v1407_v42 = vpop.eup %1406 }
 0x785   :  { %588 = vrot.lane.b32.xlu1 %v1407_v42, %s1605_s25 }
 0x787   :  { %v494_v43 = vpop.f32.mrf.mxu2 }
 0x788   :  { %v495_v44 = vadd.f32 %v1802_v56, %v494_v43 }
 0x78a   :  { %1408 = vtanh.f32 %v495_v44  ;;  %v1324_v46 = vmul.f32 -1.442695, %v495_v44 }
 0x78c   :  { %1410 = vpow2.f32 %v1324_v46 }
 0x78d   :  { %1412 = vpow2.f32 %v1326_v48 }
 0x790   :  { %v1409_v45 = vpop.eup %1408 }
 0x791   :  { %519 = vrot.lane.b32.xlu2 %v1409_v45, %s1605_s25 }
 0x792   :  { %v1411_v47 = vpop.eup %1410 }
 0x793   :  { %v500_v51 = vadd.f32 1.0, %v1411_v47  ;;  %v1413_v25 = vpop.eup %1412 }
 0x794   :  { %v566_v26 = vadd.f32 1.0, %v1413_v25 }
 0x795   :  { %1414 = vrcp.f32 %v500_v51  ;;  %v512_v33 = vand.u32 2147483648, %v500_v51  ;;  %vm506_vm9 = vweird.f32 %v500_v51  ;;  %v510_v34 = vand.u32 2147483647, %v500_v51 }
 0x796   :  { %1416 = vrcp.f32 %v566_v26  ;;  %v578_v53 = vand.u32 2147483648, %v566_v26  ;;  %vm572_vm13 = vweird.f32 %v566_v26  ;;  %v576_v55 = vand.u32 2147483647, %v566_v26 }
 0x797   :  { %v513_v37 = vor.u32 1.1754944e-38, %v512_v33  ;;  %vm511_vm11 = vcmp.eq.f32.partialorder %v510_v34, 8.507059e+37 }
 0x798   :  { %v579_v58 = vor.u32 1.1754944e-38, %v578_v53  ;;  %vm577_vm15 = vcmp.eq.f32.partialorder %v576_v55, 8.507059e+37 }
 0x79b   :  { %v1415_v16 = vpop.eup %1414 }
 0x79c   :  { %v502_v27 = vmul.f32 %v1415_v16, %v500_v51  ;;  %v1417_v30 = vpop.eup %1416  ;;  %vm507_vm8 = vweird.f32 %v1415_v16 }
 0x79d   :  { %v568_v32 = vmul.f32 %v1417_v30, %v566_v26  ;;  %vm508_vm10 = vmor %vm506_vm9, %vm507_vm8  ;;  %vm573_vm12 = vweird.f32 %v1417_v30 }
 0x79e   :  { %v503_v28 = vsub.f32 1.0, %v502_v27  ;;  %vm574_vm14 = vmor %vm572_vm13, %vm573_vm12 }
 0x79f   :  { %v569_v36 = vsub.f32 1.0, %v568_v32 }
 0x7a0   :  { %v504_v29 = vmul.f32 %v1415_v16, %v503_v28 }
 0x7a1   :  { %v570_v50 = vmul.f32 %v1417_v30, %v569_v36 }
 0x7a2   :  { %v505_v31 = vadd.f32 %v1415_v16, %v504_v29 }
 0x7a3   :  { %v571_v52 = vadd.f32 %v1417_v30, %v570_v50 }
 0x7a4   :  { %v509_v35 = vsel %vm508_vm10, %v1415_v16, %v505_v31 }
 0x7a5   :  { %v514_v40 = vsel %vm511_vm11, %v513_v37, %v509_v35  ;;  %v575_v57 = vsel %vm574_vm14, %v1417_v30, %v571_v52 }
 0x7a6   :  { %v580_v60 = vsel %vm577_vm15, %v579_v58, %v575_v57  ;;  %v517_v62 = vmul.f32 %v514_v40, %v1848_v39 }
 0x7a7   :  { %v586_v8 = vmul.f32 %v584_v3, %v580_v60 }
 0x7eb   :  { %v520_v38 = vpop.permute.xlu2 %519 }
 0x7ec   :  { %v522_v41 = vmul.f32 %v520_v38, %v514_v40 }
 0x7ee   :  { %524 = vrot.lane.b32.xlu1 %v522_v41, %s1606_s28 }
 0x7f7   :  { %v589_v59 = vpop.permute.xlu1 %588 }
 0x7f8   :  { %v591_v61 = vmul.f32 %v589_v59, %v580_v60 }
 0x7fa   :  { %593 = vrot.lane.b32.xlu0 %v591_v61, %s1606_s28 }
 0x860   :  { %v525_v63 = vpop.permute.xlu1 %524 }
 0x861   :  { %v1882_v0 = vadd.f32 %v525_v63, %v517_v62 }
 0x863   :  { %1418 = vtanh.f32 %v1882_v0 }
 0x869   :  { %v1419_v1 = vpop.eup %1418 }
 0x86a   :  { %530 = vrot.lane.b32.xlu0 %v1419_v1, %s1605_s25 }
 0x86c   :  { %v594_v49 = vpop.permute.xlu0 %593 }
 0x86d   :  { %v1887_v11 = vadd.f32 %v594_v49, %v586_v8 }
 0x86f   :  { %1420 = vtanh.f32 %v1887_v11  ;;  %v721_v62 = vrot.slane %v1887_v11, 6 }
 0x875   :  { %v1421_v13 = vpop.eup %1420 }
 0x876   :  { %599 = vrot.lane.b32.xlu2 %v1421_v13, %s1605_s25 }
 0x8d0   :  { %v600_v39 = vpop.permute.xlu2 %599 }
 0x8d1   :  { %v602_v14 = vmul.f32 %v600_v39, %v580_v60 }
 0x8d3   :  { %v674_v15 = vrot.slane %v602_v14, 6  ;;  %604 = vrot.lane.b32.xlu2 %v602_v14, %s1606_s28 }
 0x8d5   :  { %675 = vrot.lane.b32.xlu1 %v674_v15, %s1606_s28 }
 0x8db   :  { %89 = vperm.xlu2 %1360, %v64_v18  }
 0x8dc   :  { %v531_v17 = vpop.permute.xlu0 %530 }
 0x8dd   :  { %v533_v7 = vmul.f32 %v531_v17, %v514_v40  ;;  %75 = vperm.xlu1 %1359, %v64_v18  }
 0x8df   :  { %v608_v54 = vrot.slane %v533_v7, 2 }
 0x8e1   :  { %609 = vrot.lane.b32.xlu0 %v608_v54, %s1605_s25 }
 0x92d   :  { %v605_v20 = vpop.permute.xlu2 %604 }
 0x935   :  { %v90_v43 = vpop.permute.xlu2 %89 }
 0x947   :  { %v676_v19 = vpop.permute.xlu1 %675 }
 0x948   :  { %1329 = vmatmul.msk.f32.vlgmr.msrb.gmra.mxu3 %vm117_vm0, %v676_v19 }
 0x949   :  { %963 = vmatpush.msrb.mxu3 %v1667_v2  ;;  %v94_v2 = vmul.f32 %v1700_v10, %v90_v43 }
 0x94b   :  { %964 = vmatpush.msrb.mxu3 %v1672_v4 }
 0x94d   :  { %965 = vmatpush.msrb.mxu3 %v1675_v5 }
 0x94f   :  { %966 = vmatpush.msrb.mxu3 %v1679_v6  ;;  %v76_v24 = vpop.permute.xlu1 %75 }
 0x950   :  { %v80_v42 = vmul.f32 %v1698_v9, %v76_v24 }
 0x952   :  { %v82_v44 = vadd.f32 %v1705_v12, %v80_v42 }
 0x953   :  { %v610_v21 = vpop.permute.xlu0 %609 }
 0x954   :  { %v612_v22 = vsel %vm117_vm0, %v605_v20, %v610_v21  ;;  %v1907_v4 = vadd.f32 %v94_v2, %v82_v44 }
 0x955   :  { %v614_v23 = vrot.slane %v612_v22, 6 }
 0x957   :  { %1327 = vmatmul.msk.f32.vlgmr.msrb.gmra.mxu1 %vm192_vm5, %v614_v23 }
 0x9cb   :  { %v696_v5 = vpop.f32.mrf.mxu3 }
 0x9cc   :  { %v699_v6 = vadd.f32 %v696_v5, %v1907_v4 }
 0x9ce   :  { %1422 = vtanh.f32 %v699_v6  ;;  %v1330_v9 = vmul.f32 -1.442695, %v699_v6 }
 0x9d4   :  { %v1423_v45 = vpop.eup %1422  ;;  %v634_v46 = vpop.f32.mrf.mxu1 }
 0x9d5   :  { %v635_v47 = vadd.f32 %v1802_v56, %v634_v46  ;;  %725 = vrot.lane.b32.xlu0 %v1423_v45, %s1605_s25 }
 0x9d7   :  { %1424 = vtanh.f32 %v635_v47  ;;  %v1328_v12 = vmul.f32 -1.442695, %v635_v47 }
 0x9d8   :  { %1426 = vpow2.f32 %v1330_v9 }
 0x9d9   :  { %1428 = vpow2.f32 %v1328_v12 }
 0x9dd   :  { %v1425_v48 = vpop.eup %1424 }
 0x9de   :  { %659 = vrot.lane.b32.xlu1 %v1425_v48, %s1605_s25  ;;  %v1427_v10 = vpop.eup %1426 }
 0x9df   :  { %v703_v51 = vadd.f32 1.0, %v1427_v10  ;;  %v1429_v25 = vpop.eup %1428 }
 0x9e0   :  { %v640_v16 = vadd.f32 1.0, %v1429_v25 }
 0x9e1   :  { %1430 = vrcp.f32 %v703_v51  ;;  %v715_v33 = vand.u32 2147483648, %v703_v51  ;;  %vm709_vm2 = vweird.f32 %v703_v51  ;;  %v713_v35 = vand.u32 2147483647, %v703_v51 }
 0x9e2   :  { %1432 = vrcp.f32 %v640_v16  ;;  %v652_v53 = vand.u32 2147483648, %v640_v16  ;;  %vm646_vm7 = vweird.f32 %v640_v16  ;;  %v650_v55 = vand.u32 2147483647, %v640_v16 }
 0x9e3   :  { %v716_v37 = vor.u32 1.1754944e-38, %v715_v33  ;;  %vm714_vm4 = vcmp.eq.f32.partialorder %v713_v35, 8.507059e+37 }
 0x9e4   :  { %v653_v58 = vor.u32 1.1754944e-38, %v652_v53  ;;  %vm651_vm9 = vcmp.eq.f32.partialorder %v650_v55, 8.507059e+37 }
 0x9e7   :  { %v1431_v26 = vpop.eup %1430 }
 0x9e8   :  { %v705_v27 = vmul.f32 %v1431_v26, %v703_v51  ;;  %v1433_v29 = vpop.eup %1432  ;;  %vm710_vm1 = vweird.f32 %v1431_v26 }
 0x9e9   :  { %v642_v31 = vmul.f32 %v1433_v29, %v640_v16  ;;  %vm711_vm3 = vmor %vm709_vm2, %vm710_vm1  ;;  %vm647_vm6 = vweird.f32 %v1433_v29 }
 0x9ea   :  { %v706_v28 = vsub.f32 1.0, %v705_v27  ;;  %vm648_vm8 = vmor %vm646_vm7, %vm647_vm6 }
 0x9eb   :  { %v643_v34 = vsub.f32 1.0, %v642_v31 }
 0x9ec   :  { %v707_v30 = vmul.f32 %v1431_v26, %v706_v28 }
 0x9ed   :  { %v644_v38 = vmul.f32 %v1433_v29, %v643_v34 }
 0x9ee   :  { %v708_v32 = vadd.f32 %v1431_v26, %v707_v30 }
 0x9ef   :  { %v645_v52 = vadd.f32 %v1433_v29, %v644_v38 }
 0x9f0   :  { %v712_v36 = vsel %vm711_vm3, %v1431_v26, %v708_v32 }
 0x9f1   :  { %v717_v40 = vsel %vm714_vm4, %v716_v37, %v712_v36  ;;  %v649_v57 = vsel %vm648_vm8, %v1433_v29, %v645_v52 }
 0x9f2   :  { %v654_v60 = vsel %vm651_vm9, %v653_v58, %v649_v57  ;;  %v723_v63 = vmul.f32 %v721_v62, %v717_v40 }
 0x9f3   :  { %v657_v49 = vmul.f32 %v654_v60, %v1882_v0 }
 0xa47   :  { %v726_v41 = vpop.permute.xlu0 %725 }
 0xa48   :  { %v728_v50 = vmul.f32 %v726_v41, %v717_v40 }
 0xa4a   :  { %730 = vrot.lane.b32.xlu2 %v728_v50, %s1606_s28 }
 0xa50   :  { %v660_v59 = vpop.permute.xlu1 %659 }
 0xa51   :  { %v662_v61 = vmul.f32 %v660_v59, %v654_v60 }
 0xa53   :  { %664 = vrot.lane.b32.xlu0 %v662_v61, %s1606_s28 }
 0xaa4   :  { %v731_v1 = vpop.permute.xlu2 %730 }
 0xaa5   :  { %v1916_v3 = vadd.f32 %v731_v1, %v723_v63 }
 0xaa7   :  { %1434 = vtanh.f32 %v1916_v3  ;;  %v856_v50 = vrot.slane %v1916_v3, 6 }
 0xaad   :  { %v1435_v8 = vpop.eup %1434 }
 0xaae   :  { %736 = vrot.lane.b32.xlu1 %v1435_v8, %s1605_s25 }
 0xac5   :  { %v665_v13 = vpop.permute.xlu0 %664 }
 0xac6   :  { %v1921_v39 = vadd.f32 %v665_v13, %v657_v49 }
 0xac8   :  { %1436 = vtanh.f32 %v1921_v39 }
 0xace   :  { %v1437_v14 = vpop.eup %1436 }
 0xacf   :  { %670 = vrot.lane.b32.xlu2 %v1437_v14, %s1605_s25 }
 0xb20   :  { %v737_v11 = vpop.permute.xlu1 %736 }
 0xb21   :  { %v739_v15 = vmul.f32 %v737_v11, %v717_v40 }
 0xb23   :  { %741 = vrot.lane.b32.xlu0 %v739_v15, %s1606_s28 }
 0xb29   :  { %v671_v17 = vpop.permute.xlu2 %670 }
 0xb2a   :  { %v673_v7 = vmul.f32 %v671_v17, %v654_v60 }
 0xb2c   :  { %745 = vrot.lane.b32.xlu1 %v673_v7, %s1605_s25 }
 0xb95   :  { %v742_v54 = vpop.permute.xlu0 %741 }
 0xb96   :  { %1333 = vmatmul.msk.f32.vlgmr.msra.gmra.mxu2 %vm117_vm0, %v742_v54 }
 0xb9e   :  { %v746_v0 = vpop.permute.xlu1 %745 }
 0xb9f   :  { %v748_v18 = vsel %vm117_vm0, %v742_v54, %v746_v0 }
 0xba0   :  { %1331 = vmatmul.msk.f32.vlgmr.msrb.gmra.mxu0 %vm192_vm5, %v748_v18 }
 0xc19   :  { %v828_v19 = vpop.f32.mrf.mxu2 }
 0xc1a   :  { %v832_v20 = vrot.slane %v828_v19, 6 }
 0xc1c   :  { %v834_v21 = vadd.f32 %v832_v20, %v1907_v4 }
 0xc1d   :  { %v769_v22 = vpop.f32.mrf.mxu0 }
 0xc1e   :  { %1438 = vtanh.f32 %v834_v21  ;;  %v770_v23 = vadd.f32 %v1802_v56, %v769_v22  ;;  %v1334_v5 = vmul.f32 -1.442695, %v834_v21 }
 0xc20   :  { %1440 = vtanh.f32 %v770_v23  ;;  %v1332_v43 = vmul.f32 -1.442695, %v770_v23 }
 0xc22   :  { %1442 = vpow2.f32 %v1332_v43 }
 0xc24   :  { %v1439_v24 = vpop.eup %1438 }
 0xc25   :  { %860 = vrot.lane.b32.xlu0 %v1439_v24, %s1605_s25 }
 0xc26   :  { %v1441_v42 = vpop.eup %1440 }
 0xc27   :  { %794 = vrot.lane.b32.xlu2 %v1441_v42, %s1605_s25 }
 0xc28   :  { %v1443_v44 = vpop.eup %1442 }
 0xc29   :  { %v775_v2 = vadd.f32 1.0, %v1443_v44 }
 0xc2b   :  { %1444 = vrcp.f32 %v775_v2  ;;  %v787_v10 = vand.u32 2147483648, %v775_v2  ;;  %vm781_vm11 = vweird.f32 %v775_v2  ;;  %v785_v51 = vand.u32 2147483647, %v775_v2 }
 0xc2c   :  { %1446 = vpow2.f32 %v1334_v5 }
 0xc2d   :  { %v788_v16 = vor.u32 1.1754944e-38, %v787_v10  ;;  %vm786_vm13 = vcmp.eq.f32.partialorder %v785_v51, 8.507059e+37 }
 0xc31   :  { %v1445_v6 = vpop.eup %1444 }
 0xc32   :  { %v777_v45 = vmul.f32 %v1445_v6, %v775_v2  ;;  %v1447_v47 = vpop.eup %1446  ;;  %vm782_vm10 = vweird.f32 %v1445_v6 }
 0xc33   :  { %v838_v48 = vadd.f32 1.0, %v1447_v47  ;;  %vm783_vm12 = vmor %vm781_vm11, %vm782_vm10 }
 0xc34   :  { %v778_v46 = vsub.f32 1.0, %v777_v45 }
 0xc35   :  { %1448 = vrcp.f32 %v838_v48  ;;  %v850_v34 = vand.u32 2147483648, %v838_v48  ;;  %vm844_vm15 = vweird.f32 %v838_v48  ;;  %v848_v35 = vand.u32 2147483647, %v838_v48 }
 0xc36   :  { %v779_v9 = vmul.f32 %v1445_v6, %v778_v46 }
 0xc37   :  { %v851_v37 = vor.u32 1.1754944e-38, %v850_v34  ;;  %vm849_vm2 = vcmp.eq.f32.partialorder %v848_v35, 8.507059e+37 }
 0xc38   :  { %v780_v12 = vadd.f32 %v1445_v6, %v779_v9 }
 0xc3a   :  { %v784_v25 = vsel %vm783_vm12, %v1445_v6, %v780_v12 }
 0xc3b   :  { %v1449_v26 = vpop.eup %1448  ;;  %v789_v28 = vsel %vm786_vm13, %v788_v16, %v784_v25 }
 0xc3c   :  { %v840_v30 = vmul.f32 %v1449_v26, %v838_v48  ;;  %vm845_vm14 = vweird.f32 %v1449_v26  ;;  %v792_v57 = vmul.f32 %v789_v28, %v1921_v39 }
 0xc3d   :  { %vm846_vm1 = vmor %vm844_vm15, %vm845_vm14 }
 0xc3e   :  { %v841_v31 = vsub.f32 1.0, %v840_v30 }
 0xc40   :  { %v842_v32 = vmul.f32 %v1449_v26, %v841_v31 }
 0xc42   :  { %v843_v33 = vadd.f32 %v1449_v26, %v842_v32 }
 0xc44   :  { %v847_v36 = vsel %vm846_vm1, %v1449_v26, %v843_v33 }
 0xc45   :  { %v852_v40 = vsel %vm849_vm2, %v851_v37, %v847_v36 }
 0xc46   :  { %v858_v52 = vmul.f32 %v856_v50, %v852_v40 }
 0xc81   :  { %v795_v27 = vpop.permute.xlu2 %794 }
 0xc82   :  { %v797_v29 = vmul.f32 %v795_v27, %v789_v28 }
 0xc84   :  { %799 = vrot.lane.b32.xlu1 %v797_v29, %s1606_s28 }
 0xc97   :  { %v861_v38 = vpop.permute.xlu0 %860 }
 0xc98   :  { %v863_v41 = vmul.f32 %v861_v38, %v852_v40 }
 0xc9a   :  { %865 = vrot.lane.b32.xlu2 %v863_v41, %s1606_s28 }
 0xcf4   :  { %v866_v53 = vpop.permute.xlu2 %865 }
 0xcf5   :  { %v1937_v55 = vadd.f32 %v866_v53, %v858_v52 }
 0xcf6   :  { %v800_v58 = vpop.permute.xlu1 %799 }
 0xcf7   :  { %1450 = vtanh.f32 %v1937_v55  ;;  %v1941_v59 = vadd.f32 %v800_v58, %v792_v57  ;;  %v996_v38 = vrot.slane %v1937_v55, 6 }
 0xcf9   :  { %1452 = vtanh.f32 %v1941_v59 }
 0xcfd   :  { %v1451_v60 = vpop.eup %1450 }
 0xcfe   :  { %871 = vrot.lane.b32.xlu1 %v1451_v60, %s1605_s25 }
 0xcff   :  { %v1453_v61 = vpop.eup %1452 }
 0xd00   :  { %805 = vrot.lane.b32.xlu0 %v1453_v61, %s1605_s25 }
 0xd70   :  { %v872_v62 = vpop.permute.xlu1 %871 }
 0xd71   :  { %v874_v63 = vmul.f32 %v872_v62, %v852_v40 }
 0xd72   :  { %v806_v3 = vpop.permute.xlu0 %805 }
 0xd73   :  { %v946_v1 = vrot.slane %v874_v63, 2  ;;  %876 = vrot.lane.b32.xlu2 %v874_v63, %s1606_s28  ;;  %v808_v8 = vmul.f32 %v806_v3, %v789_v28 }
 0xd75   :  { %947 = vrot.lane.b32.xlu1 %v946_v1, %s1606_s28  ;;  %v880_v49 = vrot.slane %v808_v8, 6 }
 0xd77   :  { %881 = vrot.lane.b32.xlu0 %v880_v49, %s1605_s25 }
 0xdcd   :  { %v877_v13 = vpop.permute.xlu2 %876 }
 0xde7   :  { %v948_v15 = vpop.permute.xlu1 %947 }
 0xde9   :  { %v882_v39 = vpop.permute.xlu0 %881 }
 0xdea   :  { %v884_v14 = vsel %vm117_vm0, %v877_v13, %v882_v39  ;;  %v1977_v13 = vld [vmem:[%s2028_s3 + $0x1] ss:$0 sm:$0xff] }
 0xdeb   :  { %v886_v11 = vrot.slane %v884_v14, 2 }
 0xded   :  { %1335 = vmatmul.msk.f32.vlgmr.msra.gmra.mxu3 %vm192_vm5, %v886_v11 }
 0xdf5   :  { %1337 = vmatmul.msk.f32.vlgmr.msrb.gmra.mxu3 %vm117_vm0, %v948_v15 }
 0xe70   :  { %v906_v17 = vpop.f32.mrf.mxu3 }
 0xe71   :  { %v907_v7 = vadd.f32 %v1802_v56, %v906_v17 }
 0xe73   :  { %1454 = vtanh.f32 %v907_v7  ;;  %v1336_v21 = vmul.f32 -1.442695, %v907_v7 }
 0xe78   :  { %v968_v54 = vpop.f32.mrf.mxu3 }
 0xe79   :  { %v1455_v0 = vpop.eup %1454  ;;  %v972_v18 = vrot.slane %v968_v54, 4 }
 0xe7a   :  { %931 = vrot.lane.b32.xlu2 %v1455_v0, %s1605_s25 }
 0xe7b   :  { %v974_v19 = vadd.f32 %v972_v18, %v1907_v4 }
 0xe7d   :  { %1456 = vtanh.f32 %v974_v19  ;;  %v1338_v43 = vmul.f32 -1.442695, %v974_v19 }
 0xe7e   :  { %1458 = vpow2.f32 %v1336_v21 }
 0xe83   :  { %v1457_v20 = vpop.eup %1456 }
 0xe84   :  { %1000 = vrot.lane.b32.xlu0 %v1457_v20, %s1605_s25  ;;  %v1459_v22 = vpop.eup %1458 }
 0xe85   :  { %v912_v23 = vadd.f32 1.0, %v1459_v22 }
 0xe87   :  { %1460 = vrcp.f32 %v912_v23  ;;  %v924_v5 = vand.u32 2147483648, %v912_v23  ;;  %vm918_vm4 = vweird.f32 %v912_v23  ;;  %v922_v6 = vand.u32 2147483647, %v912_v23 }
 0xe88   :  { %1462 = vpow2.f32 %v1338_v43 }
 0xe89   :  { %v925_v46 = vor.u32 1.1754944e-38, %v924_v5  ;;  %vm923_vm7 = vcmp.eq.f32.partialorder %v922_v6, 8.507059e+37 }
 0xe8d   :  { %v1461_v24 = vpop.eup %1460 }
 0xe8e   :  { %v914_v42 = vmul.f32 %v1461_v24, %v912_v23  ;;  %vm919_vm3 = vweird.f32 %v1461_v24  ;;  %v1463_v47 = vpop.eup %1462 }
 0xe8f   :  { %vm920_vm6 = vmor %vm918_vm4, %vm919_vm3  ;;  %v978_v10 = vadd.f32 1.0, %v1463_v47 }
 0xe90   :  { %v915_v56 = vsub.f32 1.0, %v914_v42 }
 0xe91   :  { %1464 = vrcp.f32 %v978_v10  ;;  %v990_v28 = vand.u32 2147483648, %v978_v10  ;;  %vm984_vm9 = vweird.f32 %v978_v10  ;;  %v988_v29 = vand.u32 2147483647, %v978_v10 }
 0xe92   :  { %v916_v44 = vmul.f32 %v1461_v24, %v915_v56 }
 0xe93   :  { %v991_v31 = vor.u32 1.1754944e-38, %v990_v28  ;;  %vm989_vm11 = vcmp.eq.f32.partialorder %v988_v29, 8.507059e+37 }
 0xe94   :  { %v917_v2 = vadd.f32 %v1461_v24, %v916_v44 }
 0xe96   :  { %v921_v45 = vsel %vm920_vm6, %v1461_v24, %v917_v2  ;;  %vm1226_vm6 = vcmask 261126  }
 0xe97   :  { %v926_v9 = vsel %vm923_vm7, %v925_v46, %v921_v45  ;;  %v1465_v51 = vpop.eup %1464 }
 0xe98   :  { %v980_v25 = vmul.f32 %v1465_v51, %v978_v10  ;;  %vm985_vm8 = vweird.f32 %v1465_v51  ;;  %v929_v35 = vmul.f32 %v926_v9, %v1941_v59 }
 0xe99   :  { %vm986_vm10 = vmor %vm984_vm9, %vm985_vm8  ;;  %vm1238_vm9 = vcmask 254976  }
 0xe9a   :  { %v981_v16 = vsub.f32 1.0, %v980_v25 }
 0xe9c   :  { %v982_v26 = vmul.f32 %v1465_v51, %v981_v16 }
 0xe9e   :  { %v983_v27 = vadd.f32 %v1465_v51, %v982_v26 }
 0xea0   :  { %v987_v30 = vsel %vm986_vm10, %v1465_v51, %v983_v27  ;;  %vm1267_vm10 = vcmask 1024  }
 0xea1   :  { %v992_v33 = vsel %vm989_vm11, %v991_v31, %v987_v30 }
 0xea2   :  { %v998_v41 = vmul.f32 %v996_v38, %v992_v33 }
 0xed4   :  { %v932_v48 = vpop.permute.xlu2 %931 }
 0xed5   :  { %v934_v12 = vmul.f32 %v932_v48, %v926_v9 }
 0xed7   :  { %936 = vrot.lane.b32.xlu1 %v934_v12, %s1606_s28 }
 0xef6   :  { %v1001_v32 = vpop.permute.xlu0 %1000 }
 0xef7   :  { %v1003_v34 = vmul.f32 %v1001_v32, %v992_v33 }
 0xef9   :  { %1005 = vrot.lane.b32.xlu2 %v1003_v34, %s1606_s28 }
 0xf49   :  { %v937_v36 = vpop.permute.xlu1 %936 }
 0xf4a   :  { %v1959_v37 = vadd.f32 %v937_v36, %v929_v35 }
 0xf4c   :  { %1466 = vtanh.f32 %v1959_v37 }
 0xf52   :  { %v1467_v40 = vpop.eup %1466 }
 0xf53   :  { %v1006_v50 = vpop.permute.xlu2 %1005  ;;  %942 = vrot.lane.b32.xlu0 %v1467_v40, %s1605_s25 }
 0xf54   :  { %v1964_v52 = vadd.f32 %v1006_v50, %v998_v41 }
 0xf56   :  { %1468 = vtanh.f32 %v1964_v52  ;;  %v1136_v30 = vrot.slane %v1964_v52, 6 }
 0xf5c   :  { %v1469_v53 = vpop.eup %1468 }
 0xf5d   :  { %1011 = vrot.lane.b32.xlu1 %v1469_v53, %s1605_s25 }
 0xfc5   :  { %v943_v57 = vpop.permute.xlu0 %942 }
 0xfc6   :  { %v945_v58 = vmul.f32 %v943_v57, %v926_v9 }
 0xfc8   :  { %v1020_v59 = vrot.slane %v945_v58, 4 }
 0xfca   :  { %1021 = vrot.lane.b32.xlu0 %v1020_v59, %s1605_s25 }
 0xfcf   :  { %v1012_v60 = vpop.permute.xlu1 %1011 }
 0xfd0   :  { %v1014_v61 = vmul.f32 %v1012_v60, %v992_v33 }
 0xfd2   :  { %v1086_v55 = vrot.slane %v1014_v61, 4  ;;  %1016 = vrot.lane.b32.xlu2 %v1014_v61, %s1606_s28 }
 0xfd4   :  { %1087 = vrot.lane.b32.xlu1 %v1086_v55, %s1606_s28 }
0x102c   :  { %v1017_v62 = vpop.permute.xlu2 %1016 }
0x103c   :  { %v1022_v63 = vpop.permute.xlu0 %1021 }
0x103d   :  { %v1024_v1 = vsel %vm117_vm0, %v1017_v62, %v1022_v63  ;;  %v1999_v62 = vld [vmem:[%s2029_s4] ss:$0 sm:$0xff]  ;;  %s1608_s4 = smov [#allocation7]  }
0x103e   :  { %v1026_v3 = vrot.slane %v1024_v1, 4  ;;  %s1275_s17 = sshll.u32 %s1608_s4, 4  ;;  %s1276_s17 = int_to_ptr.vmem [resolvable:$true] %s1275_s17 }
0x1040   :  { %1339 = vmatmul.msk.f32.vlgmr.msrb.gmra.mxu2 %vm192_vm5, %v1026_v3 }
0x1046   :  { %v1088_v8 = vpop.permute.xlu1 %1087 }
0x1047   :  { %1341 = vmatmul.msk.f32.vlgmr.msra.gmra.mxu0 %vm117_vm0, %v1088_v8 }
0x10c3   :  { %v1046_v49 = vpop.f32.mrf.mxu2 }
0x10c4   :  { %v1047_v39 = vadd.f32 %v1977_v13, %v1046_v49  ;;  %v1108_v14 = vpop.f32.mrf.mxu0 }
0x10c5   :  { %v1112_v11 = vrot.slane %v1108_v14, 2 }
0x10c6   :  { %1470 = vtanh.f32 %v1047_v39  ;;  %v1340_v54 = vmul.f32 -1.442695, %v1047_v39 }
0x10c7   :  { %v1114_v15 = vadd.f32 %v1112_v11, %v1907_v4 }
0x10c9   :  { %1472 = vtanh.f32 %v1114_v15  ;;  %v1342_v21 = vmul.f32 -1.442695, %v1114_v15 }
0x10ca   :  { %1474 = vpow2.f32 %v1340_v54 }
0x10cc   :  { %v1471_v17 = vpop.eup %1470 }
0x10cd   :  { %1071 = vrot.lane.b32.xlu2 %v1471_v17, %s1605_s25 }
0x10cf   :  { %v1473_v7 = vpop.eup %1472 }
0x10d0   :  { %1140 = vrot.lane.b32.xlu0 %v1473_v7, %s1605_s25  ;;  %v1475_v0 = vpop.eup %1474 }
0x10d1   :  { %v1052_v18 = vadd.f32 1.0, %v1475_v0 }
0x10d3   :  { %1476 = vrcp.f32 %v1052_v18  ;;  %v1064_v42 = vand.u32 2147483648, %v1052_v18  ;;  %vm1058_vm13 = vweird.f32 %v1052_v18  ;;  %v1062_v43 = vand.u32 2147483647, %v1052_v18 }
0x10d4   :  { %1478 = vpow2.f32 %v1342_v21 }
0x10d5   :  { %v1065_v2 = vor.u32 1.1754944e-38, %v1064_v42  ;;  %vm1063_vm15 = vcmp.eq.f32.partialorder %v1062_v43, 8.507059e+37 }
0x10d9   :  { %v1477_v19 = vpop.eup %1476 }
0x10da   :  { %v1054_v20 = vmul.f32 %v1477_v19, %v1052_v18  ;;  %v1479_v24 = vpop.eup %1478  ;;  %vm1059_vm12 = vweird.f32 %v1477_v19 }
0x10db   :  { %v1118_v56 = vadd.f32 1.0, %v1479_v24  ;;  %vm1060_vm14 = vmor %vm1058_vm13, %vm1059_vm12 }
0x10dc   :  { %v1055_v22 = vsub.f32 1.0, %v1054_v20 }
0x10dd   :  { %1480 = vrcp.f32 %v1118_v56  ;;  %v1130_v10 = vand.u32 2147483648, %v1118_v56  ;;  %vm1124_vm2 = vweird.f32 %v1118_v56  ;;  %v1128_v51 = vand.u32 2147483647, %v1118_v56 }
0x10de   :  { %v1056_v23 = vmul.f32 %v1477_v19, %v1055_v22 }
0x10df   :  { %v1131_v16 = vor.u32 1.1754944e-38, %v1130_v10  ;;  %vm1129_vm4 = vcmp.eq.f32.partialorder %v1128_v51, 8.507059e+37 }
0x10e0   :  { %v1057_v4 = vadd.f32 %v1477_v19, %v1056_v23 }
0x10e2   :  { %v1061_v44 = vsel %vm1060_vm14, %v1477_v19, %v1057_v4 }
0x10e3   :  { %v1066_v6 = vsel %vm1063_vm15, %v1065_v2, %v1061_v44  ;;  %v1481_v46 = vpop.eup %1480 }
0x10e4   :  { %v1120_v47 = vmul.f32 %v1481_v46, %v1118_v56  ;;  %vm1125_vm1 = vweird.f32 %v1481_v46  ;;  %v1069_v29 = vmul.f32 %v1066_v6, %v1959_v37 }
0x10e5   :  { %vm1126_vm3 = vmor %vm1124_vm2, %vm1125_vm1 }
0x10e6   :  { %v1121_v48 = vsub.f32 1.0, %v1120_v47 }
0x10e8   :  { %v1122_v9 = vmul.f32 %v1481_v46, %v1121_v48 }
0x10ea   :  { %v1123_v12 = vadd.f32 %v1481_v46, %v1122_v9 }
0x10ec   :  { %v1127_v25 = vsel %vm1126_vm3, %v1481_v46, %v1123_v12 }
0x10ed   :  { %v1132_v26 = vsel %vm1129_vm4, %v1131_v16, %v1127_v25 }
0x10ee   :  { %v1138_v33 = vmul.f32 %v1136_v30, %v1132_v26 }
0x1127   :  { %v1072_v5 = vpop.permute.xlu2 %1071 }
0x1128   :  { %v1074_v45 = vmul.f32 %v1072_v5, %v1066_v6 }
0x112a   :  { %1076 = vrot.lane.b32.xlu1 %v1074_v45, %s1606_s28 }
0x1142   :  { %v1141_v27 = vpop.permute.xlu0 %1140 }
0x1143   :  { %v1143_v28 = vmul.f32 %v1141_v27, %v1132_v26 }
0x1145   :  { %1145 = vrot.lane.b32.xlu2 %v1143_v28, %s1606_s28 }
0x119c   :  { %v1077_v31 = vpop.permute.xlu1 %1076 }
0x119d   :  { %v1079_v32 = vadd.f32 %v1077_v31, %v1069_v29 }
0x119f   :  { %1482 = vtanh.f32 %v1079_v32  ;;  %v1146_v34 = vpop.permute.xlu2 %1145 }
0x11a0   :  { %v1148_v35 = vadd.f32 %v1146_v34, %v1138_v33 }
0x11a2   :  { %1484 = vtanh.f32 %v1148_v35 }
0x11a5   :  { %v1483_v36 = vpop.eup %1482 }
0x11a6   :  { %1082 = vrot.lane.b32.xlu0 %v1483_v36, %s1605_s25 }
0x11a8   :  { %v1485_v38 = vpop.eup %1484 }
0x11a9   :  { %1151 = vrot.lane.b32.xlu1 %v1485_v38, %s1605_s25 }
0x1218   :  { %v1083_v40 = vpop.permute.xlu0 %1082 }
0x1219   :  { %v1085_v41 = vmul.f32 %v1083_v40, %v1066_v6 }
0x121b   :  { %v1160_v50 = vrot.slane %v1085_v41, 2  ;;  %v1152_v53 = vpop.permute.xlu1 %1151 }
0x121c   :  { %v1154_v37 = vmul.f32 %v1152_v53, %v1132_v26 }
0x121d   :  { %1161 = vrot.lane.b32.xlu0 %v1160_v50, %s1605_s25 }
0x121e   :  { %1156 = vrot.lane.b32.xlu2 %v1154_v37, %s1606_s28 }
0x1278   :  { %v1157_v52 = vpop.permute.xlu2 %1156 }
0x1279   :  { %1227 = vst.msk [vmem:[#allocation7 - $0x6] sm:$0xc0] %vm1226_vm6, %v1157_v52 }
0x128f   :  { %v1162_v57 = vpop.permute.xlu0 %1161 }
0x1290   :  { %v1164_v58 = vsel %vm117_vm0, %v1157_v52, %v1162_v57 }
0x1291   :  { %v1166_v59 = vrot.slane %v1164_v58, 6 }
0x1293   :  { %1343 = vmatmul.msk.f32.vlgmr.msra.gmra.mxu1 %vm192_vm5, %v1166_v59 }
0x1310   :  { %v1186_v60 = vpop.f32.mrf.mxu1 }
0x1311   :  { %v1187_v61 = vadd.f32 %v1977_v13, %v1186_v60 }
0x1313   :  { %1486 = vtanh.f32 %v1187_v61  ;;  %v1344_v63 = vmul.f32 -1.442695, %v1187_v61 }
0x1315   :  { %1488 = vpow2.f32 %v1344_v63 }
0x1319   :  { %v1487_v55 = vpop.eup %1486 }
0x131a   :  { %1211 = vrot.lane.b32.xlu1 %v1487_v55, %s1605_s25 }
0x131b   :  { %v1489_v1 = vpop.eup %1488 }
0x131c   :  { %v1192_v3 = vadd.f32 1.0, %v1489_v1 }
0x131e   :  { %1490 = vrcp.f32 %v1192_v3  ;;  %v1204_v11 = vand.u32 2147483648, %v1192_v3  ;;  %vm1198_vm5 = vweird.f32 %v1192_v3  ;;  %v1202_v15 = vand.u32 2147483647, %v1192_v3 }
0x1320   :  { %v1205_v7 = vor.u32 1.1754944e-38, %v1204_v11  ;;  %vm1203_vm8 = vcmp.eq.f32.partialorder %v1202_v15, 8.507059e+37 }
0x1322   :  { %1250 = vrot.lane.b32.xlu1 %v1999_v62, %s1607_s16 }
0x1324   :  { %v1491_v8 = vpop.eup %1490 }
0x1325   :  { %v1194_v49 = vmul.f32 %v1491_v8, %v1192_v3  ;;  %vm1199_vm0 = vweird.f32 %v1491_v8 }
0x1326   :  { %vm1200_vm7 = vmor %vm1198_vm5, %vm1199_vm0 }
0x1327   :  { %v1195_v13 = vsub.f32 1.0, %v1194_v49 }
0x1329   :  { %v1196_v39 = vmul.f32 %v1491_v8, %v1195_v13 }
0x132a   :  { %1229 = vrot.lane.b32.xlu1 %v1148_v35, %s1607_s16 }
0x132b   :  { %v1197_v14 = vadd.f32 %v1491_v8, %v1196_v39 }
0x132d   :  { %v1201_v17 = vsel %vm1200_vm7, %v1491_v8, %v1197_v14 }
0x132e   :  { %v1206_v0 = vsel %vm1203_vm8, %v1205_v7, %v1201_v17 }
0x132f   :  { %v1209_v21 = vmul.f32 %v1206_v0, %v1079_v32 }
0x138c   :  { %v1212_v54 = vpop.permute.xlu1 %1211 }
0x138d   :  { %v1214_v18 = vmul.f32 %v1212_v54, %v1206_v0 }
0x138f   :  { %1216 = vrot.lane.b32.xlu2 %v1214_v18, %s1606_s28 }
0x1394   :  { %v1251_v19 = vpop.permute.xlu1 %1250 }
0x139c   :  { %v1230_v20 = vpop.permute.xlu1 %1229 }
0x139d   :  { %1232 = vst.msk [vmem:[#allocation8 - $0x6] sm:$0xc0] %vm1226_vm6, %v1230_v20 }
0x13e9   :  { %v1217_v22 = vpop.permute.xlu2 %1216 }
0x13ea   :  { %v1219_v23 = vadd.f32 %v1217_v22, %v1209_v21 }
0x13ec   :  { %1492 = vtanh.f32 %v1219_v23  ;;  %1241 = vrot.lane.b32.xlu1 %v1219_v23, %s1607_s16 }
0x13f2   :  { %v1493_v24 = vpop.eup %1492 }
0x13f3   :  { %1222 = vrot.lane.b32.xlu0 %v1493_v24, %s1605_s25 }
0x145e   :  { %v1242_v4 = vpop.permute.xlu1 %1241 }
0x145f   :  { %1245 = vst.msk [vmem:[#allocation8 + $0x2] sm:$0x3] %vm1238_vm9, %v1242_v4 }
0x1460   :  { %1296 = dma.vmem_to_hbm [thread:$0]  %s1289_s2, 64, %s1291_s24, [#allocation9], %s1606_s28, %s1606_s28, %s1610_s21  }
0x1465   :  { %v1223_v42 = vpop.permute.xlu0 %1222 }
0x1466   :  { %v1225_v56 = vmul.f32 %v1223_v42, %v1206_v0 }
0x1468   :  { %v1246_v43 = vmax.f32 %v1225_v56, 0.0 }
0x146a   :  { %v1253_v44 = vmul.f32 %v1251_v19, %v1246_v43 }
0x146c   :  { %1255 = vrot.lane.b32.xlu2 %v1253_v44, %s1606_s28 }
0x1474   :  { %1234 = vrot.lane.b32.xlu2 %v1225_v56, %s1606_s28 }
0x14c6   :  { %v1256_v2 = vpop.permute.xlu2 %1255 }
0x14c7   :  { %v1258_v5 = vsel %vm1238_vm9, %v1256_v2, 0.0 }
0x14c8   :  { %1259 = vadd.xlane.f32.xlu0 %v1258_v5 }
0x14ce   :  { %v1235_v6 = vpop.permute.xlu2 %1234 }
0x14cf   :  { %1239 = vst.msk [vmem:[#allocation7 + $0x2] sm:$0x3] %vm1238_vm9, %v1235_v6 }
0x14d0   :  { %1283 = dma.vmem_to_hbm [thread:$0]  %s1276_s17, 64, %s1278_s20, [#allocation4], %s1606_s28, %s1606_s28, %s1610_s21  }
0x153b   :  { %v1260_v45 = vpop.xlane.xlu0 %1259 }
0x153c   :  { %v1262_v46 = vadd.f32 %v1999_v62, %v1260_v45 }
0x153e   :  { %1264 = vrot.lane.b32.xlu2 %v1262_v46, %s1607_s16 }
0x1598   :  { %v1265_v47 = vpop.permute.xlu2 %1264 }
0x1599   :  { %1268 = vst.msk [vmem:[%s2032_s7] sm:$0x3] %vm1267_vm10, %v1265_v47 }
0x159a   :  { %1595 = dma.done.wait [#allocation4], 64  }
0x159b   :  { %1596 = vsyncadd [#allocation4], 4294967232 }
0x159c   :  { %1597 = dma.done.wait [#allocation9], 64  }
0x159d   :  { %1598 = vsyncadd [#allocation9], 4294967232 }
0x159e   :  { %1307 = vsyncpa [#allocation3], 1 }
0x159f   :  { %1308 = vsyncpa [#allocation6], 1 }
0x15a0   :  { %1309 = vsyncpa [#allocation4], 1 }
0x15a1   :  { %1310 = vsyncpa [#allocation9], 1 }

</bundles_post_ra>
